<compile_context>
chip_gen: v7x
topology: tpu7x:2x2x1
jax: 0.10.0
libtpu: 0.0.40
codegen_flags: <defaults>
</compile_context>

<pallas_src>
import functools

import jax
import jax.numpy as jnp
from jax.experimental import pallas as pl
from jax.experimental.pallas import tpu as pltpu


# ----------------------------- tiling helpers --------------------------------

_ROW_TILE_CAP = 512          # rows per block for row-wise kernels (multiple of 8)
_TILE_BUDGET = 4 << 20       # ~4 MiB per large block (fits v5e/v6e/v7x VMEM w/ 2x buf)


def _pick_tile(extent, row_bytes, budget=_TILE_BUDGET):
    """Largest tile (multiple of 8 dividing `extent`, or the full extent) whose
    block stays under `budget` bytes."""
    if extent * row_bytes <= budget:
        return extent
    for t in (512, 256, 128, 64, 32, 16, 8):
        if extent % t == 0 and t * row_bytes <= budget:
            return t
    return extent


def _row_tiled(kernel, row_args, const_args, out_cols, out_dtype, cap=_ROW_TILE_CAP):
    """Run `kernel` over a 1-D row grid.  row_args are (rows, C) arrays tiled over
    rows; const_args are small 2-D arrays kept resident (index_map -> (0, 0))."""
    rows = row_args[0].shape[0]
    if rows <= cap:
        tm, padded = rows, rows
    else:
        tm = cap
        padded = ((rows + tm - 1) // tm) * tm
    if padded != rows:
        row_args = [jnp.pad(a, ((0, padded - rows), (0, 0))) for a in row_args]
    row_specs = [pl.BlockSpec((tm, a.shape[1]), lambda i: (i, 0)) for a in row_args]
    const_specs = [pl.BlockSpec(a.shape, lambda i: (0, 0)) for a in const_args]
    y = pl.pallas_call(
        kernel,
        grid=(padded // tm,),
        in_specs=row_specs + const_specs,
        out_specs=pl.BlockSpec((tm, out_cols), lambda i: (i, 0)),
        out_shape=jax.ShapeDtypeStruct((padded, out_cols), out_dtype),
        compiler_params=pltpu.CompilerParams(dimension_semantics=("parallel",)),
    )(*row_args, *const_args)
    return y if padded == rows else y[:rows]


# ------------------------------ Pallas kernels --------------------------------

def _linear_kernel(x_ref, w_ref, b_ref, o_ref):
    o_ref[...] = (jnp.dot(x_ref[...], w_ref[...],
                          preferred_element_type=jnp.float32)
                  + b_ref[...]).astype(o_ref.dtype)


def _ln_matmul_kernel(x_ref, g_ref, bln_ref, w_ref, b_ref, o_ref):
    # LayerNorm(x) @ W + b   (used for fused LN1 + concatenated QKV projection)
    x = x_ref[...]
    xf = x.astype(jnp.float32)
    mu = jnp.mean(xf, axis=-1, keepdims=True)
    var = jnp.mean(jnp.square(xf - mu), axis=-1, keepdims=True)
    xn = (xf - mu) * jax.lax.rsqrt(var + 1e-5) * g_ref[...] + bln_ref[...]
    o_ref[...] = (jnp.dot(xn.astype(x.dtype), w_ref[...],
                          preferred_element_type=jnp.float32)
                  + b_ref[...]).astype(o_ref.dtype)


def _residual_matmul_kernel(res_ref, x_ref, w_ref, b_ref, o_ref):
    # res + x @ W + b   (output projection + residual add)
    y = jnp.dot(x_ref[...], w_ref[...], preferred_element_type=jnp.float32) + b_ref[...]
    o_ref[...] = (res_ref[...].astype(jnp.float32) + y).astype(o_ref.dtype)


def _ln_swiglu_kernel(x_ref, g_ref, bln_ref, w1_ref, b1_ref, w3_ref, b3_ref,
                      w2_ref, b2_ref, o_ref):
    # x + W2( silu(W1 LN(x)) * (W3 LN(x)) )   (fused LN2 + SwiGLU FFN + residual)
    x = x_ref[...]
    xf = x.astype(jnp.float32)
    mu = jnp.mean(xf, axis=-1, keepdims=True)
    var = jnp.mean(jnp.square(xf - mu), axis=-1, keepdims=True)
    xn = ((xf - mu) * jax.lax.rsqrt(var + 1e-5) * g_ref[...] + bln_ref[...]).astype(x.dtype)
    h1 = jnp.dot(xn, w1_ref[...], preferred_element_type=jnp.float32) + b1_ref[...]
    h3 = jnp.dot(xn, w3_ref[...], preferred_element_type=jnp.float32) + b3_ref[...]
    h = (h1 * jax.nn.sigmoid(h1)) * h3
    y = jnp.dot(h.astype(x.dtype), w2_ref[...],
                preferred_element_type=jnp.float32) + b2_ref[...]
    o_ref[...] = (xf + y).astype(o_ref.dtype)


def _pair_inject_kernel(p1_ref, hi_ref, hj_ref, g_ref, b_ref, o_ref):
    # p[b,i,j] = LN( p1[i,j] + lin_i(h_a)[b,j] + lin_j(h_a)[b,i] )
    p1 = p1_ref[...].astype(jnp.float32)      # (ti, L, Z)  shared across batch
    hi = hi_ref[0].astype(jnp.float32)        # (L, Z)      varies with j
    hj = hj_ref[0].astype(jnp.float32)        # (ti, Z)     varies with i
    x = p1 + hi[None, :, :] + hj[:, None, :]
    mu = jnp.mean(x, axis=-1, keepdims=True)
    var = jnp.mean(jnp.square(x - mu), axis=-1, keepdims=True)
    xn = (x - mu) * jax.lax.rsqrt(var + 1e-5)
    o_ref[0] = (xn * g_ref[...] + b_ref[...]).astype(o_ref.dtype)


def _attn_kernel(q_ref, k_ref, v_ref, bias_ref, o_ref, *, scale):
    # all heads of one batch element, one query tile per grid step
    q = q_ref[0]                                  # (H, TQ, hd)
    k = k_ref[0]                                  # (H, L,  hd)
    v = v_ref[0]                                  # (H, L,  hd)
    bias = bias_ref[0].astype(jnp.float32)        # (H, TQ, L)
    s = jnp.einsum('hqd,hkd->hqk', q, k,
                   preferred_element_type=jnp.float32) * scale + bias
    m = jnp.max(s, axis=-1, keepdims=True)
    e = jnp.exp(s - m)
    denom = jnp.sum(e, axis=-1, keepdims=True)
    probs = e * pl.reciprocal(denom, approx=True)
    o = jnp.einsum('hqk,hkd->hqd', probs.astype(v.dtype), v,
                   preferred_element_type=jnp.float32)
    o_ref[0] = o.astype(o_ref.dtype)


# ------------------------------ kernel wrappers --------------------------------

def linear_pallas(x, w, b):
    lead, K, N = x.shape[:-1], x.shape[-1], w.shape[1]
    y = _row_tiled(_linear_kernel, [x.reshape(-1, K)], [w, b.reshape(1, N)], N, x.dtype)
    return y.reshape(*lead, N)


def ln_matmul_pallas(x, g, bln, w, b):
    lead, D, N = x.shape[:-1], x.shape[-1], w.shape[1]
    y = _row_tiled(_ln_matmul_kernel, [x.reshape(-1, D)],
                   [g.reshape(1, D), bln.reshape(1, D), w, b.reshape(1, N)], N, x.dtype)
    return y.reshape(*lead, N)


def residual_matmul_pallas(res, x, w, b):
    lead, K, N = x.shape[:-1], x.shape[-1], w.shape[1]
    y = _row_tiled(_residual_matmul_kernel,
                   [res.reshape(-1, N), x.reshape(-1, K)],
                   [w, b.reshape(1, N)], N, res.dtype)
    return y.reshape(*lead, N)


def ln_swiglu_pallas(x, g, bln, w1, b1, w3, b3, w2, b2):
    lead, D = x.shape[:-1], x.shape[-1]
    F = w1.shape[1]
    y = _row_tiled(_ln_swiglu_kernel, [x.reshape(-1, D)],
                   [g.reshape(1, D), bln.reshape(1, D),
                    w1, b1.reshape(1, F), w3, b3.reshape(1, F),
                    w2, b2.reshape(1, D)], D, x.dtype)
    return y.reshape(*lead, D)


def pair_inject_pallas(p1, hi, hj, g, b):
    """p1: (L, L, Z) positional pair (shared over batch); hi/hj: (B, L, Z)."""
    B, L, Z = hi.shape
    ti = _pick_tile(L, 2 * L * Z * 4)            # input + output row of the pair tile
    return pl.pallas_call(
        _pair_inject_kernel,
        grid=(B, L // ti),
        in_specs=[
            pl.BlockSpec((ti, L, Z), lambda bb, it: (it, 0, 0)),
            pl.BlockSpec((1, L, Z), lambda bb, it: (bb, 0, 0)),
            pl.BlockSpec((1, ti, Z), lambda bb, it: (bb, it, 0)),
            pl.BlockSpec((1, 1, Z), lambda bb, it: (0, 0, 0)),
            pl.BlockSpec((1, 1, Z), lambda bb, it: (0, 0, 0)),
        ],
        out_specs=pl.BlockSpec((1, ti, L, Z), lambda bb, it: (bb, it, 0, 0)),
        out_shape=jax.ShapeDtypeStruct((B, L, L, Z), p1.dtype),
        compiler_params=pltpu.CompilerParams(
            dimension_semantics=("parallel", "parallel")),
    )(p1, hi, hj, g.reshape(1, 1, Z), b.reshape(1, 1, Z))


def attention_pallas(q, k, v, bias):
    """q,k,v: (B, H, L, hd); bias: (B, H, L, L) -> (B, H, L, hd)."""
    B, H, L, hd = q.shape
    scale = 1.0 / float(hd) ** 0.5
    tq = _pick_tile(L, H * (L + 2 * hd) * 4)     # bias + q/out rows per query row
    kern = functools.partial(_attn_kernel, scale=scale)
    return pl.pallas_call(
        kern,
        grid=(B, L // tq),
        in_specs=[
            pl.BlockSpec((1, H, tq, hd), lambda b, i: (b, 0, i, 0)),
            pl.BlockSpec((1, H, L, hd), lambda b, i: (b, 0, 0, 0)),
            pl.BlockSpec((1, H, L, hd), lambda b, i: (b, 0, 0, 0)),
            pl.BlockSpec((1, H, tq, L), lambda b, i: (b, 0, i, 0)),
        ],
        out_specs=pl.BlockSpec((1, H, tq, hd), lambda b, i: (b, 0, i, 0)),
        out_shape=jax.ShapeDtypeStruct((B, H, L, hd), q.dtype),
        compiler_params=pltpu.CompilerParams(
            dimension_semantics=("parallel", "parallel")),
    )(q, k, v, bias)


# ------------------------ parameters (deterministic) ---------------------------

def _init_linear(key, fan_in, fan_out, bias=True):
    kw, kb = jax.random.split(key)
    s = 1.0 / (fan_in ** 0.5)
    w = jax.random.uniform(kw, (fan_in, fan_out), jnp.float32, -s, s)
    b = (jax.random.uniform(kb, (fan_out,), jnp.float32, -s, s)
         if bias else jnp.zeros((fan_out,), jnp.float32))
    return {"w": w, "b": b}


def init_decoder_params(key, *, encoding_dim, node_dim, edge_dim, num_heads,
                        mlp_dim, num_blocks, pos_embed_r, num_beads,
                        bead_embed_dim):
    keys = jax.random.split(key, 8 + num_blocks)
    params = {
        "node_init": _init_linear(keys[0], encoding_dim, node_dim),
        "pos_embed": _init_linear(keys[1], 2 * pos_embed_r + 1, edge_dim),
        "bead_embed": 0.1 * jax.random.normal(keys[2], (num_beads, bead_embed_dim),
                                              jnp.float32),
        "edge_init_i": _init_linear(keys[3], bead_embed_dim, edge_dim),
        "edge_init_j": _init_linear(keys[4], bead_embed_dim, edge_dim),
        "pair_ln": {"g": jnp.ones((edge_dim,), jnp.float32),
                    "b": jnp.zeros((edge_dim,), jnp.float32)},
        # deterministic stand-in for the sam_openfold_aa_map buffer
        "aa_map": (jnp.arange(num_beads, dtype=jnp.int32) * 7 + 3) % num_beads,
    }
    blocks = []
    for l in range(num_blocks):
        bk = jax.random.split(keys[8 + l], 7)
        blocks.append({
            "ln1": {"g": jnp.ones((node_dim,), jnp.float32),
                    "b": jnp.zeros((node_dim,), jnp.float32)},
            # fused Q/K/V projection: (D, 3D)
            "qkv": _init_linear(bk[0], node_dim, 3 * node_dim),
            "o": _init_linear(bk[1], node_dim, node_dim),
            "pair_bias": _init_linear(bk[2], edge_dim, num_heads),   # add_bias_2d
            "ln2": {"g": jnp.ones((node_dim,), jnp.float32),
                    "b": jnp.zeros((node_dim,), jnp.float32)},
            "ff_w1": _init_linear(bk[3], node_dim, mlp_dim),
            "ff_w3": _init_linear(bk[4], node_dim, mlp_dim),
            "ff_w2": _init_linear(bk[5], mlp_dim, node_dim),
        })
    params["blocks"] = blocks
    return params


# --------------------------------- forward -------------------------------------

def transformer_block(x, p, bp, num_heads):
    B, L, D = x.shape
    hd = D // num_heads

    # fused LN1 + concatenated QKV projection (single (tm,D)x(D,3D) matmul)
    qkv = ln_matmul_pallas(x, bp["ln1"]["g"], bp["ln1"]["b"],
                           bp["qkv"]["w"], bp["qkv"]["b"])            # (B, L, 3D)
    q, k, v = jnp.split(qkv, 3, axis=-1)
    q = q.reshape(B, L, num_heads, hd).transpose(0, 2, 1, 3)          # (B,H,L,hd)
    k = k.reshape(B, L, num_heads, hd).transpose(0, 2, 1, 3)
    v = v.reshape(B, L, num_heads, hd).transpose(0, 2, 1, 3)

    # pair bias produced directly in (B, H, L, L) layout: one fused einsum,
    # no H-minor intermediate and no separate transpose pass through HBM.
    bias = jnp.einsum("bijz,zh->bhij", p, bp["pair_bias"]["w"],
                      preferred_element_type=jnp.float32)
    bias = (bias + bp["pair_bias"]["b"][None, :, None, None]).astype(x.dtype)

    att = attention_pallas(q, k, v, bias)                             # (B,H,L,hd)
    att = att.transpose(0, 2, 1, 3).reshape(B, L, D)

    # fused output projection + residual add
    x = residual_matmul_pallas(x, att, bp["o"]["w"], bp["o"]["b"])

    # fused LN2 + SwiGLU feed-forward + residual add
    x = ln_swiglu_pallas(x, bp["ln2"]["g"], bp["ln2"]["b"],
                         bp["ff_w1"]["w"], bp["ff_w1"]["b"],
                         bp["ff_w3"]["w"], bp["ff_w3"]["b"],
                         bp["ff_w2"]["w"], bp["ff_w2"]["b"])
    return x


def all_atom_decoder_forward(params, z, a, *, num_heads, pos_embed_r):
    """z: (B, L, E) float32; a: (B, L) int32 bead indices."""
    B, L, _ = z.shape

    # 1) node_init_project (node_init_mode='linear'); noise_sigma=None -> skip.
    h_node = linear_pallas(z, params["node_init"]["w"], params["node_init"]["b"])

    # 2) AF2_PositionalEmbedding: clipped relative positions -> embedding GATHER
    #    (equivalent to one-hot @ W + b, without the L*L*(2r+1) one-hot matmul).
    res = jnp.arange(L, dtype=jnp.int32)
    d = jnp.clip(res[:, None] - res[None, :], -pos_embed_r, pos_embed_r) + pos_embed_r
    p1 = params["pos_embed"]["w"][d] + params["pos_embed"]["b"]          # (L, L, Z)

    # 3) embed_inject_mode == 'outer_sum': bead embedding -> outer sum -> pair LN.
    #    p1 is NOT broadcast over batch; the kernel reads the shared (L, L, Z) tensor.
    h_a = params["bead_embed"][a]                                        # (B,L,bead)
    hi = linear_pallas(h_a, params["edge_init_i"]["w"], params["edge_init_i"]["b"])
    hj = linear_pallas(h_a, params["edge_init_j"]["w"], params["edge_init_j"]["b"])
    p = pair_inject_pallas(p1, hi, hj, params["pair_ln"]["g"], params["pair_ln"]["b"])

    # 4) pair-biased transformer trunk (TransformerBlock_v01 x num_blocks).
    for bp in params["blocks"]:
        h_node = transformer_block(h_node, p, bp, num_heads)

    # 5) block_transition=None -> nn.Identity().
    # 6) map bead types to OpenFold amino-acid indices.
    a_openfold = params["aa_map"][a]

    # TODO(synk): StructureModule (IPA stack, frames, torsion->atom14) not translated.
    return {"single": h_node, "pair": p, "a": a_openfold}


# ----------------------------------- main ---------------------------------------

if __name__ == "__main__":
    B, L = 2, 8
    encoding_dim = 16
    node_dim = 32
    edge_dim = 16
    num_heads = 4
    mlp_dim = node_dim * 2
    num_blocks = 2
    pos_embed_r = 4
    num_beads = 20
    bead_embed_dim = 8

    key = jax.random.PRNGKey(0)
    kp, kz, ka = jax.random.split(key, 3)
    params = init_decoder_params(
        kp, encoding_dim=encoding_dim, node_dim=node_dim, edge_dim=edge_dim,
        num_heads=num_heads, mlp_dim=mlp_dim, num_blocks=num_blocks,
        pos_embed_r=pos_embed_r, num_beads=num_beads,
        bead_embed_dim=bead_embed_dim)

    z = jax.random.normal(kz, (B, L, encoding_dim), jnp.float32)
    a = jax.random.randint(ka, (B, L), 0, num_beads, jnp.int32)

    fwd = jax.jit(functools.partial(all_atom_decoder_forward,
                                    num_heads=num_heads, pos_embed_r=pos_embed_r))
    out = fwd(params, z, a)
    jax.block_until_ready(out)

    assert out["single"].shape == (B, L, node_dim)
    assert out["pair"].shape == (B, L, L, edge_dim)
    assert out["a"].shape == (B, L)
    assert out["single"].dtype == jnp.float32
    assert bool(jnp.all(jnp.isfinite(out["single"])))
    assert bool(jnp.all(jnp.isfinite(out["pair"])))
    print("KERNEL_OK")
</pallas_src>

<mosaic_0001>
module attributes {stable_mosaic.version = 11 : i64} {
  func.func @_linear_kernel(%arg0: i32, %arg1: memref<16x16xf32, #tpu.memory_space<vmem>>, %arg2: memref<16x32xf32, #tpu.memory_space<vmem>>, %arg3: memref<1x32xf32, #tpu.memory_space<vmem>>, %arg4: memref<16x32xf32, #tpu.memory_space<vmem>>) attributes {dimension_semantics = [#tpu.dimension_semantics<parallel>], iteration_bounds = array<i64: 1>, scalar_prefetch = 0 : i64, scratch_operands = 0 : i64, tpu.core_type = #tpu.core_type<tc>, window_params = [{transform_indices = @transform_0, window_bounds = array<i64: 16, 16>}, {pipeline_mode = #tpu.pipeline_mode<synchronous>, transform_indices = @transform_1, window_bounds = array<i64: 16, 32>}, {pipeline_mode = #tpu.pipeline_mode<synchronous>, transform_indices = @transform_2, window_bounds = array<i64: 1, 32>}, {transform_indices = @transform_3, window_bounds = array<i64: 16, 32>}]} {
    %c0 = arith.constant 0 : index
    %c0_0 = arith.constant 0 : index
    %0 = vector.load %arg1[%c0, %c0_0] : memref<16x16xf32, #tpu.memory_space<vmem>>, vector<16x16xf32>
    %c0_1 = arith.constant 0 : index
    %c0_2 = arith.constant 0 : index
    %1 = vector.load %arg2[%c0_1, %c0_2] : memref<16x32xf32, #tpu.memory_space<vmem>>, vector<16x32xf32>
    %cst = arith.constant dense<0.000000e+00> : vector<16x32xf32>
    %2 = tpu.matmul %0, %1, %cst {dimension_numbers = #tpu.dot_dimension_numbers<[1], [0], [0], [1], [0, 0, 1, 1], [], []>} : vector<16x16xf32>, vector<16x32xf32>, vector<16x32xf32> -> vector<16x32xf32>
    %c0_3 = arith.constant 0 : index
    %c0_4 = arith.constant 0 : index
    %3 = vector.load %arg3[%c0_3, %c0_4] : memref<1x32xf32, #tpu.memory_space<vmem>>, vector<1x32xf32>
    %4 = vector.broadcast %3 : vector<1x32xf32> to vector<16x32xf32>
    %5 = arith.addf %2, %4 : vector<16x32xf32>
    %c0_5 = arith.constant 0 : index
    %c0_6 = arith.constant 0 : index
    %6 = vector.load %arg4[%c0_5, %c0_6] : memref<16x32xf32, #tpu.memory_space<vmem>>, vector<16x32xf32>
    tpu.vector_store %arg4[%c0_5, %c0_6], %5 {strides = array<i32>} : memref<16x32xf32, #tpu.memory_space<vmem>>, vector<16x32xf32>,
    return
  }
  func.func @transform_0(%arg0: i32) -> (i32, i32) {
    %c0_i32 = arith.constant 0 : i32
    %c0_i32_0 = arith.constant 0 : i32
    return %arg0, %c0_i32 : i32, i32
  }
  func.func @transform_1(%arg0: i32) -> (i32, i32) {
    %c0_i32 = arith.constant 0 : i32
    %c0_i32_0 = arith.constant 0 : i32
    %c0_i32_1 = arith.constant 0 : i32
    return %c0_i32, %c0_i32_0 : i32, i32
  }
  func.func @transform_2(%arg0: i32) -> (i32, i32) {
    %c0_i32 = arith.constant 0 : i32
    %c0_i32_0 = arith.constant 0 : i32
    %c0_i32_1 = arith.constant 0 : i32
    return %c0_i32, %c0_i32_0 : i32, i32
  }
  func.func @transform_3(%arg0: i32) -> (i32, i32) {
    %c0_i32 = arith.constant 0 : i32
    %c0_i32_0 = arith.constant 0 : i32
    return %arg0, %c0_i32 : i32, i32
  }
}

module attributes {stable_mosaic.version = 11 : i64} {
  func.func @_linear_kernel(%arg0: i32, %arg1: memref<16x8xf32, #tpu.memory_space<vmem>>, %arg2: memref<8x16xf32, #tpu.memory_space<vmem>>, %arg3: memref<1x16xf32, #tpu.memory_space<vmem>>, %arg4: memref<16x16xf32, #tpu.memory_space<vmem>>) attributes {dimension_semantics = [#tpu.dimension_semantics<parallel>], iteration_bounds = array<i64: 1>, scalar_prefetch = 0 : i64, scratch_operands = 0 : i64, tpu.core_type = #tpu.core_type<tc>, window_params = [{transform_indices = @transform_0, window_bounds = array<i64: 16, 8>}, {pipeline_mode = #tpu.pipeline_mode<synchronous>, transform_indices = @transform_1, window_bounds = array<i64: 8, 16>}, {pipeline_mode = #tpu.pipeline_mode<synchronous>, transform_indices = @transform_2, window_bounds = array<i64: 1, 16>}, {transform_indices = @transform_3, window_bounds = array<i64: 16, 16>}]} {
    %c0 = arith.constant 0 : index
    %c0_0 = arith.constant 0 : index
    %0 = vector.load %arg1[%c0, %c0_0] : memref<16x8xf32, #tpu.memory_space<vmem>>, vector<16x8xf32>
    %c0_1 = arith.constant 0 : index
    %c0_2 = arith.constant 0 : index
    %1 = vector.load %arg2[%c0_1, %c0_2] : memref<8x16xf32, #tpu.memory_space<vmem>>, vector<8x16xf32>
    %cst = arith.constant dense<0.000000e+00> : vector<16x16xf32>
    %2 = tpu.matmul %0, %1, %cst {dimension_numbers = #tpu.dot_dimension_numbers<[1], [0], [0], [1], [0, 0, 1, 1], [], []>} : vector<16x8xf32>, vector<8x16xf32>, vector<16x16xf32> -> vector<16x16xf32>
    %c0_3 = arith.constant 0 : index
    %c0_4 = arith.constant 0 : index
    %3 = vector.load %arg3[%c0_3, %c0_4] : memref<1x16xf32, #tpu.memory_space<vmem>>, vector<1x16xf32>
    %4 = vector.broadcast %3 : vector<1x16xf32> to vector<16x16xf32>
    %5 = arith.addf %2, %4 : vector<16x16xf32>
    %c0_5 = arith.constant 0 : index
    %c0_6 = arith.constant 0 : index
    %6 = vector.load %arg4[%c0_5, %c0_6] : memref<16x16xf32, #tpu.memory_space<vmem>>, vector<16x16xf32>
    tpu.vector_store %arg4[%c0_5, %c0_6], %5 {strides = array<i32>} : memref<16x16xf32, #tpu.memory_space<vmem>>, vector<16x16xf32>,
    return
  }
  func.func @transform_0(%arg0: i32) -> (i32, i32) {
    %c0_i32 = arith.constant 0 : i32
    %c0_i32_0 = arith.constant 0 : i32
    return %arg0, %c0_i32 : i32, i32
  }
  func.func @transform_1(%arg0: i32) -> (i32, i32) {
    %c0_i32 = arith.constant 0 : i32
    %c0_i32_0 = arith.constant 0 : i32
    %c0_i32_1 = arith.constant 0 : i32
    return %c0_i32, %c0_i32_0 : i32, i32
  }
  func.func @transform_2(%arg0: i32) -> (i32, i32) {
    %c0_i32 = arith.constant 0 : i32
    %c0_i32_0 = arith.constant 0 : i32
    %c0_i32_1 = arith.constant 0 : i32
    return %c0_i32, %c0_i32_0 : i32, i32
  }
  func.func @transform_3(%arg0: i32) -> (i32, i32) {
    %c0_i32 = arith.constant 0 : i32
    %c0_i32_0 = arith.constant 0 : i32
    return %arg0, %c0_i32 : i32, i32
  }
}

module attributes {stable_mosaic.version = 11 : i64} {
  func.func @_pair_inject_kernel(%arg0: i32, %arg1: i32, %arg2: memref<8x8x16xf32, #tpu.memory_space<vmem>>, %arg3: memref<1x8x16xf32, #tpu.memory_space<vmem>>, %arg4: memref<1x8x16xf32, #tpu.memory_space<vmem>>, %arg5: memref<1x1x16xf32, #tpu.memory_space<vmem>>, %arg6: memref<1x1x16xf32, #tpu.memory_space<vmem>>, %arg7: memref<1x8x8x16xf32, #tpu.memory_space<vmem>>) attributes {dimension_semantics = [#tpu.dimension_semantics<parallel>, #tpu.dimension_semantics<parallel>], iteration_bounds = array<i64: 2, 1>, scalar_prefetch = 0 : i64, scratch_operands = 0 : i64, tpu.core_type = #tpu.core_type<tc>, window_params = [{transform_indices = @transform_0, window_bounds = array<i64: 8, 8, 16>}, {transform_indices = @transform_1, window_bounds = array<i64: 1, 8, 16>}, {transform_indices = @transform_2, window_bounds = array<i64: 1, 8, 16>}, {pipeline_mode = #tpu.pipeline_mode<synchronous>, transform_indices = @transform_3, window_bounds = array<i64: 1, 1, 16>}, {pipeline_mode = #tpu.pipeline_mode<synchronous>, transform_indices = @transform_4, window_bounds = array<i64: 1, 1, 16>}, {transform_indices = @transform_5, window_bounds = array<i64: 1, 8, 8, 16>}]} {
    %c0 = arith.constant 0 : index
    %c0_0 = arith.constant 0 : index
    %c0_1 = arith.constant 0 : index
    %0 = vector.load %arg2[%c0, %c0_0, %c0_1] : memref<8x8x16xf32, #tpu.memory_space<vmem>>, vector<8x8x16xf32>
    %c0_2 = arith.constant 0 : index
    %c0_3 = arith.constant 0 : index
    %c0_4 = arith.constant 0 : index
    %1 = vector.load %arg3[%c0_2, %c0_3, %c0_4] : memref<1x8x16xf32, #tpu.memory_space<vmem>>, vector<1x8x16xf32>
    %2 = vector.shape_cast %1 : vector<1x8x16xf32> to vector<8x16xf32>
    %c0_5 = arith.constant 0 : index
    %c0_6 = arith.constant 0 : index
    %c0_7 = arith.constant 0 : index
    %3 = vector.load %arg4[%c0_5, %c0_6, %c0_7] : memref<1x8x16xf32, #tpu.memory_space<vmem>>, vector<1x8x16xf32>
    %4 = vector.shape_cast %3 : vector<1x8x16xf32> to vector<8x16xf32>
    %5 = vector.shape_cast %2 : vector<8x16xf32> to vector<1x8x16xf32>
    %6 = vector.broadcast %5 : vector<1x8x16xf32> to vector<8x8x16xf32>
    %7 = arith.addf %0, %6 : vector<8x8x16xf32>
    %8 = vector.shape_cast %4 : vector<8x16xf32> to vector<8x1x16xf32>
    %9 = vector.broadcast %8 : vector<8x1x16xf32> to vector<8x8x16xf32>
    %10 = arith.addf %7, %9 : vector<8x8x16xf32>
    %cst = arith.constant dense<0.000000e+00> : vector<8x8xf32>
    %11 = vector.multi_reduction <add>, %10, %cst [2] : vector<8x8x16xf32> to vector<8x8xf32>
    %12 = vector.shape_cast %11 : vector<8x8xf32> to vector<8x8x1xf32>
    %cst_8 = arith.constant 1.600000e+01 : f32
    %13 = vector.broadcast %cst_8 : f32 to vector<8x8x1xf32>
    %14 = arith.divf %12, %13 : vector<8x8x1xf32>
    %15 = vector.broadcast %14 : vector<8x8x1xf32> to vector<8x8x16xf32>
    %16 = arith.subf %10, %15 : vector<8x8x16xf32>
    %17 = arith.mulf %16, %16 : vector<8x8x16xf32>
    %cst_9 = arith.constant dense<0.000000e+00> : vector<8x8xf32>
    %18 = vector.multi_reduction <add>, %17, %cst_9 [2] : vector<8x8x16xf32> to vector<8x8xf32>
    %19 = vector.shape_cast %18 : vector<8x8xf32> to vector<8x8x1xf32>
    %cst_10 = arith.constant 1.600000e+01 : f32
    %20 = vector.broadcast %cst_10 : f32 to vector<8x8x1xf32>
    %21 = arith.divf %19, %20 : vector<8x8x1xf32>
    %22 = vector.broadcast %14 : vector<8x8x1xf32> to vector<8x8x16xf32>
    %23 = arith.subf %10, %22 : vector<8x8x16xf32>
    %cst_11 = arith.constant 9.99999974E-6 : f32
    %24 = vector.broadcast %cst_11 : f32 to vector<8x8x1xf32>
    %25 = arith.addf %21, %24 : vector<8x8x1xf32>
    %26 = math.rsqrt %25 : vector<8x8x1xf32>
    %27 = vector.broadcast %26 : vector<8x8x1xf32> to vector<8x8x16xf32>
    %28 = arith.mulf %23, %27 : vector<8x8x16xf32>
    %c0_12 = arith.constant 0 : index
    %c0_13 = arith.constant 0 : index
    %c0_14 = arith.constant 0 : index
    %29 = vector.load %arg5[%c0_12, %c0_13, %c0_14] : memref<1x1x16xf32, #tpu.memory_space<vmem>>, vector<1x1x16xf32>
    %30 = vector.broadcast %29 : vector<1x1x16xf32> to vector<8x8x16xf32>
    %31 = arith.mulf %28, %30 : vector<8x8x16xf32>
    %c0_15 = arith.constant 0 : index
    %c0_16 = arith.constant 0 : index
    %c0_17 = arith.constant 0 : index
    %32 = vector.load %arg6[%c0_15, %c0_16, %c0_17] : memref<1x1x16xf32, #tpu.memory_space<vmem>>, vector<1x1x16xf32>
    %33 = vector.broadcast %32 : vector<1x1x16xf32> to vector<8x8x16xf32>
    %34 = arith.addf %31, %33 : vector<8x8x16xf32>
    %c0_18 = arith.constant 0 : index
    %c0_19 = arith.constant 0 : index
    %c0_20 = arith.constant 0 : index
    %c0_21 = arith.constant 0 : index
    %35 = vector.load %arg7[%c0_18, %c0_19, %c0_20, %c0_21] : memref<1x8x8x16xf32, #tpu.memory_space<vmem>>, vector<1x8x8x16xf32>
    %36 = vector.shape_cast %35 : vector<1x8x8x16xf32> to vector<8x8x16xf32>
    %37 = vector.shape_cast %34 : vector<8x8x16xf32> to vector<1x8x8x16xf32>
    tpu.vector_store %arg7[%c0_18, %c0_19, %c0_20, %c0_21], %37 {strides = array<i32>} : memref<1x8x8x16xf32, #tpu.memory_space<vmem>>, vector<1x8x8x16xf32>,
    return
  }
  func.func @transform_0(%arg0: i32, %arg1: i32) -> (i32, i32, i32) {
    %c0_i32 = arith.constant 0 : i32
    %c0_i32_0 = arith.constant 0 : i32
    %c0_i32_1 = arith.constant 0 : i32
    return %arg1, %c0_i32, %c0_i32_0 : i32, i32, i32
  }
  func.func @transform_1(%arg0: i32, %arg1: i32) -> (i32, i32, i32) {
    %c0_i32 = arith.constant 0 : i32
    %c0_i32_0 = arith.constant 0 : i32
    %c0_i32_1 = arith.constant 0 : i32
    return %arg0, %c0_i32, %c0_i32_0 : i32, i32, i32
  }
  func.func @transform_2(%arg0: i32, %arg1: i32) -> (i32, i32, i32) {
    %c0_i32 = arith.constant 0 : i32
    %c0_i32_0 = arith.constant 0 : i32
    return %arg0, %arg1, %c0_i32 : i32, i32, i32
  }
  func.func @transform_3(%arg0: i32, %arg1: i32) -> (i32, i32, i32) {
    %c0_i32 = arith.constant 0 : i32
    %c0_i32_0 = arith.constant 0 : i32
    %c0_i32_1 = arith.constant 0 : i32
    %c0_i32_2 = arith.constant 0 : i32
    return %c0_i32, %c0_i32_0, %c0_i32_1 : i32, i32, i32
  }
  func.func @transform_4(%arg0: i32, %arg1: i32) -> (i32, i32, i32) {
    %c0_i32 = arith.constant 0 : i32
    %c0_i32_0 = arith.constant 0 : i32
    %c0_i32_1 = arith.constant 0 : i32
    %c0_i32_2 = arith.constant 0 : i32
    return %c0_i32, %c0_i32_0, %c0_i32_1 : i32, i32, i32
  }
  func.func @transform_5(%arg0: i32, %arg1: i32) -> (i32, i32, i32, i32) {
    %c0_i32 = arith.constant 0 : i32
    %c0_i32_0 = arith.constant 0 : i32
    %c0_i32_1 = arith.constant 0 : i32
    return %arg0, %arg1, %c0_i32, %c0_i32_0 : i32, i32, i32, i32
  }
}

module attributes {stable_mosaic.version = 11 : i64} {
  func.func @_ln_matmul_kernel(%arg0: i32, %arg1: memref<16x32xf32, #tpu.memory_space<vmem>>, %arg2: memref<1x32xf32, #tpu.memory_space<vmem>>, %arg3: memref<1x32xf32, #tpu.memory_space<vmem>>, %arg4: memref<32x96xf32, #tpu.memory_space<vmem>>, %arg5: memref<1x96xf32, #tpu.memory_space<vmem>>, %arg6: memref<16x96xf32, #tpu.memory_space<vmem>>) attributes {dimension_semantics = [#tpu.dimension_semantics<parallel>], iteration_bounds = array<i64: 1>, scalar_prefetch = 0 : i64, scratch_operands = 0 : i64, tpu.core_type = #tpu.core_type<tc>, window_params = [{transform_indices = @transform_0, window_bounds = array<i64: 16, 32>}, {pipeline_mode = #tpu.pipeline_mode<synchronous>, transform_indices = @transform_1, window_bounds = array<i64: 1, 32>}, {pipeline_mode = #tpu.pipeline_mode<synchronous>, transform_indices = @transform_2, window_bounds = array<i64: 1, 32>}, {pipeline_mode = #tpu.pipeline_mode<synchronous>, transform_indices = @transform_3, window_bounds = array<i64: 32, 96>}, {pipeline_mode = #tpu.pipeline_mode<synchronous>, transform_indices = @transform_4, window_bounds = array<i64: 1, 96>}, {transform_indices = @transform_5, window_bounds = array<i64: 16, 96>}]} {
    %c0 = arith.constant 0 : index
    %c0_0 = arith.constant 0 : index
    %0 = vector.load %arg1[%c0, %c0_0] : memref<16x32xf32, #tpu.memory_space<vmem>>, vector<16x32xf32>
    %cst = arith.constant dense<0.000000e+00> : vector<16xf32>
    %1 = vector.multi_reduction <add>, %0, %cst [1] : vector<16x32xf32> to vector<16xf32>
    %2 = vector.shape_cast %1 : vector<16xf32> to vector<16x1xf32>
    %cst_1 = arith.constant 3.200000e+01 : f32
    %3 = vector.broadcast %cst_1 : f32 to vector<16x1xf32>
    %4 = arith.divf %2, %3 : vector<16x1xf32>
    %5 = vector.broadcast %4 : vector<16x1xf32> to vector<16x32xf32>
    %6 = arith.subf %0, %5 : vector<16x32xf32>
    %7 = arith.mulf %6, %6 : vector<16x32xf32>
    %cst_2 = arith.constant dense<0.000000e+00> : vector<16xf32>
    %8 = vector.multi_reduction <add>, %7, %cst_2 [1] : vector<16x32xf32> to vector<16xf32>
    %9 = vector.shape_cast %8 : vector<16xf32> to vector<16x1xf32>
    %cst_3 = arith.constant 3.200000e+01 : f32
    %10 = vector.broadcast %cst_3 : f32 to vector<16x1xf32>
    %11 = arith.divf %9, %10 : vector<16x1xf32>
    %12 = vector.broadcast %4 : vector<16x1xf32> to vector<16x32xf32>
    %13 = arith.subf %0, %12 : vector<16x32xf32>
    %cst_4 = arith.constant 9.99999974E-6 : f32
    %14 = vector.broadcast %cst_4 : f32 to vector<16x1xf32>
    %15 = arith.addf %11, %14 : vector<16x1xf32>
    %16 = math.rsqrt %15 : vector<16x1xf32>
    %17 = vector.broadcast %16 : vector<16x1xf32> to vector<16x32xf32>
    %18 = arith.mulf %13, %17 : vector<16x32xf32>
    %c0_5 = arith.constant 0 : index
    %c0_6 = arith.constant 0 : index
    %19 = vector.load %arg2[%c0_5, %c0_6] : memref<1x32xf32, #tpu.memory_space<vmem>>, vector<1x32xf32>
    %20 = vector.broadcast %19 : vector<1x32xf32> to vector<16x32xf32>
    %21 = arith.mulf %18, %20 : vector<16x32xf32>
    %c0_7 = arith.constant 0 : index
    %c0_8 = arith.constant 0 : index
    %22 = vector.load %arg3[%c0_7, %c0_8] : memref<1x32xf32, #tpu.memory_space<vmem>>, vector<1x32xf32>
    %23 = vector.broadcast %22 : vector<1x32xf32> to vector<16x32xf32>
    %24 = arith.addf %21, %23 : vector<16x32xf32>
    %c0_9 = arith.constant 0 : index
    %c0_10 = arith.constant 0 : index
    %25 = vector.load %arg4[%c0_9, %c0_10] : memref<32x96xf32, #tpu.memory_space<vmem>>, vector<32x96xf32>
    %cst_11 = arith.constant dense<0.000000e+00> : vector<16x96xf32>
    %26 = tpu.matmul %24, %25, %cst_11 {dimension_numbers = #tpu.dot_dimension_numbers<[1], [0], [0], [1], [0, 0, 1, 1], [], []>} : vector<16x32xf32>, vector<32x96xf32>, vector<16x96xf32> -> vector<16x96xf32>
    %c0_12 = arith.constant 0 : index
    %c0_13 = arith.constant 0 : index
    %27 = vector.load %arg5[%c0_12, %c0_13] : memref<1x96xf32, #tpu.memory_space<vmem>>, vector<1x96xf32>
    %28 = vector.broadcast %27 : vector<1x96xf32> to vector<16x96xf32>
    %29 = arith.addf %26, %28 : vector<16x96xf32>
    %c0_14 = arith.constant 0 : index
    %c0_15 = arith.constant 0 : index
    %30 = vector.load %arg6[%c0_14, %c0_15] : memref<16x96xf32, #tpu.memory_space<vmem>>, vector<16x96xf32>
    tpu.vector_store %arg6[%c0_14, %c0_15], %29 {strides = array<i32>} : memref<16x96xf32, #tpu.memory_space<vmem>>, vector<16x96xf32>,
    return
  }
  func.func @transform_0(%arg0: i32) -> (i32, i32) {
    %c0_i32 = arith.constant 0 : i32
    %c0_i32_0 = arith.constant 0 : i32
    return %arg0, %c0_i32 : i32, i32
  }
  func.func @transform_1(%arg0: i32) -> (i32, i32) {
    %c0_i32 = arith.constant 0 : i32
    %c0_i32_0 = arith.constant 0 : i32
    %c0_i32_1 = arith.constant 0 : i32
    return %c0_i32, %c0_i32_0 : i32, i32
  }
  func.func @transform_2(%arg0: i32) -> (i32, i32) {
    %c0_i32 = arith.constant 0 : i32
    %c0_i32_0 = arith.constant 0 : i32
    %c0_i32_1 = arith.constant 0 : i32
    return %c0_i32, %c0_i32_0 : i32, i32
  }
  func.func @transform_3(%arg0: i32) -> (i32, i32) {
    %c0_i32 = arith.constant 0 : i32
    %c0_i32_0 = arith.constant 0 : i32
    %c0_i32_1 = arith.constant 0 : i32
    return %c0_i32, %c0_i32_0 : i32, i32
  }
  func.func @transform_4(%arg0: i32) -> (i32, i32) {
    %c0_i32 = arith.constant 0 : i32
    %c0_i32_0 = arith.constant 0 : i32
    %c0_i32_1 = arith.constant 0 : i32
    return %c0_i32, %c0_i32_0 : i32, i32
  }
  func.func @transform_5(%arg0: i32) -> (i32, i32) {
    %c0_i32 = arith.constant 0 : i32
    %c0_i32_0 = arith.constant 0 : i32
    return %arg0, %c0_i32 : i32, i32
  }
}

module attributes {stable_mosaic.version = 11 : i64} {
  func.func @_attn_kernel(%arg0: i32, %arg1: i32, %arg2: memref<1x4x8x8xf32, #tpu.memory_space<vmem>>, %arg3: memref<1x4x8x8xf32, #tpu.memory_space<vmem>>, %arg4: memref<1x4x8x8xf32, #tpu.memory_space<vmem>>, %arg5: memref<1x4x8x8xf32, #tpu.memory_space<vmem>>, %arg6: memref<1x4x8x8xf32, #tpu.memory_space<vmem>>) attributes {dimension_semantics = [#tpu.dimension_semantics<parallel>, #tpu.dimension_semantics<parallel>], iteration_bounds = array<i64: 2, 1>, scalar_prefetch = 0 : i64, scratch_operands = 0 : i64, tpu.core_type = #tpu.core_type<tc>, window_params = [{transform_indices = @transform_0, window_bounds = array<i64: 1, 4, 8, 8>}, {transform_indices = @transform_1, window_bounds = array<i64: 1, 4, 8, 8>}, {transform_indices = @transform_2, window_bounds = array<i64: 1, 4, 8, 8>}, {transform_indices = @transform_3, window_bounds = array<i64: 1, 4, 8, 8>}, {transform_indices = @transform_4, window_bounds = array<i64: 1, 4, 8, 8>}]} {
    %c0 = arith.constant 0 : index
    %c0_0 = arith.constant 0 : index
    %c0_1 = arith.constant 0 : index
    %c0_2 = arith.constant 0 : index
    %0 = vector.load %arg2[%c0, %c0_0, %c0_1, %c0_2] : memref<1x4x8x8xf32, #tpu.memory_space<vmem>>, vector<1x4x8x8xf32>
    %1 = vector.shape_cast %0 : vector<1x4x8x8xf32> to vector<4x8x8xf32>
    %c0_3 = arith.constant 0 : index
    %c0_4 = arith.constant 0 : index
    %c0_5 = arith.constant 0 : index
    %c0_6 = arith.constant 0 : index
    %2 = vector.load %arg3[%c0_3, %c0_4, %c0_5, %c0_6] : memref<1x4x8x8xf32, #tpu.memory_space<vmem>>, vector<1x4x8x8xf32>
    %3 = vector.shape_cast %2 : vector<1x4x8x8xf32> to vector<4x8x8xf32>
    %c0_7 = arith.constant 0 : index
    %c0_8 = arith.constant 0 : index
    %c0_9 = arith.constant 0 : index
    %c0_10 = arith.constant 0 : index
    %4 = vector.load %arg4[%c0_7, %c0_8, %c0_9, %c0_10] : memref<1x4x8x8xf32, #tpu.memory_space<vmem>>, vector<1x4x8x8xf32>
    %5 = vector.shape_cast %4 : vector<1x4x8x8xf32> to vector<4x8x8xf32>
    %c0_11 = arith.constant 0 : index
    %c0_12 = arith.constant 0 : index
    %c0_13 = arith.constant 0 : index
    %c0_14 = arith.constant 0 : index
    %6 = vector.load %arg5[%c0_11, %c0_12, %c0_13, %c0_14] : memref<1x4x8x8xf32, #tpu.memory_space<vmem>>, vector<1x4x8x8xf32>
    %7 = vector.shape_cast %6 : vector<1x4x8x8xf32> to vector<4x8x8xf32>
    "tpu.trace_start"() <{level = 10 : i32, message = "hqd,hkd->hqk"}> : () -> ()
    %cst = arith.constant dense<0.000000e+00> : vector<4x8x8xf32>
    %8 = tpu.matmul %1, %3, %cst {dimension_numbers = #tpu.dot_dimension_numbers<[2], [2], [1], [1], [0, 0, 0, 1, 1, 1], [0], [0]>} : vector<4x8x8xf32>, vector<4x8x8xf32>, vector<4x8x8xf32> -> vector<4x8x8xf32>
    "tpu.trace_stop"() : () -> ()
    %cst_15 = arith.constant 0.353553385 : f32
    %9 = vector.broadcast %cst_15 : f32 to vector<4x8x8xf32>
    %10 = arith.mulf %8, %9 : vector<4x8x8xf32>
    %11 = arith.addf %10, %7 : vector<4x8x8xf32>
    %cst_16 = arith.constant dense<0xFF800000> : vector<4x8xf32>
    %12 = vector.multi_reduction <maximumf>, %11, %cst_16 [2] : vector<4x8x8xf32> to vector<4x8xf32>
    %13 = vector.shape_cast %12 : vector<4x8xf32> to vector<4x8x1xf32>
    %14 = vector.broadcast %13 : vector<4x8x1xf32> to vector<4x8x8xf32>
    %15 = arith.subf %11, %14 : vector<4x8x8xf32>
    %16 = math.exp %15 : vector<4x8x8xf32>
    %cst_17 = arith.constant dense<0.000000e+00> : vector<4x8xf32>
    %17 = vector.multi_reduction <add>, %16, %cst_17 [2] : vector<4x8x8xf32> to vector<4x8xf32>
    %18 = vector.shape_cast %17 : vector<4x8xf32> to vector<4x8x1xf32>
    %19 = tpu.reciprocal %18 {approx = true} : vector<4x8x1xf32> -> vector<4x8x1xf32>
    %20 = vector.broadcast %19 : vector<4x8x1xf32> to vector<4x8x8xf32>
    %21 = arith.mulf %16, %20 : vector<4x8x8xf32>
    "tpu.trace_start"() <{level = 10 : i32, message = "hqk,hkd->hqd"}> : () -> ()
    %cst_18 = arith.constant dense<0.000000e+00> : vector<4x8x8xf32>
    %22 = tpu.matmul %21, %5, %cst_18 {dimension_numbers = #tpu.dot_dimension_numbers<[2], [1], [1], [2], [0, 0, 0, 1, 1, 2], [0], [0]>} : vector<4x8x8xf32>, vector<4x8x8xf32>, vector<4x8x8xf32> -> vector<4x8x8xf32>
    "tpu.trace_stop"() : () -> ()
    %c0_19 = arith.constant 0 : index
    %c0_20 = arith.constant 0 : index
    %c0_21 = arith.constant 0 : index
    %c0_22 = arith.constant 0 : index
    %23 = vector.load %arg6[%c0_19, %c0_20, %c0_21, %c0_22] : memref<1x4x8x8xf32, #tpu.memory_space<vmem>>, vector<1x4x8x8xf32>
    %24 = vector.shape_cast %23 : vector<1x4x8x8xf32> to vector<4x8x8xf32>
    %25 = vector.shape_cast %22 : vector<4x8x8xf32> to vector<1x4x8x8xf32>
    tpu.vector_store %arg6[%c0_19, %c0_20, %c0_21, %c0_22], %25 {strides = array<i32>} : memref<1x4x8x8xf32, #tpu.memory_space<vmem>>, vector<1x4x8x8xf32>,
    return
  }
  func.func @transform_0(%arg0: i32, %arg1: i32) -> (i32, i32, i32, i32) {
    %c0_i32 = arith.constant 0 : i32
    %c0_i32_0 = arith.constant 0 : i32
    %c0_i32_1 = arith.constant 0 : i32
    return %arg0, %c0_i32, %arg1, %c0_i32_0 : i32, i32, i32, i32
  }
  func.func @transform_1(%arg0: i32, %arg1: i32) -> (i32, i32, i32, i32) {
    %c0_i32 = arith.constant 0 : i32
    %c0_i32_0 = arith.constant 0 : i32
    %c0_i32_1 = arith.constant 0 : i32
    %c0_i32_2 = arith.constant 0 : i32
    return %arg0, %c0_i32, %c0_i32_0, %c0_i32_1 : i32, i32, i32, i32
  }
  func.func @transform_2(%arg0: i32, %arg1: i32) -> (i32, i32, i32, i32) {
    %c0_i32 = arith.constant 0 : i32
    %c0_i32_0 = arith.constant 0 : i32
    %c0_i32_1 = arith.constant 0 : i32
    %c0_i32_2 = arith.constant 0 : i32
    return %arg0, %c0_i32, %c0_i32_0, %c0_i32_1 : i32, i32, i32, i32
  }
  func.func @transform_3(%arg0: i32, %arg1: i32) -> (i32, i32, i32, i32) {
    %c0_i32 = arith.constant 0 : i32
    %c0_i32_0 = arith.constant 0 : i32
    %c0_i32_1 = arith.constant 0 : i32
    return %arg0, %c0_i32, %arg1, %c0_i32_0 : i32, i32, i32, i32
  }
  func.func @transform_4(%arg0: i32, %arg1: i32) -> (i32, i32, i32, i32) {
    %c0_i32 = arith.constant 0 : i32
    %c0_i32_0 = arith.constant 0 : i32
    %c0_i32_1 = arith.constant 0 : i32
    return %arg0, %c0_i32, %arg1, %c0_i32_0 : i32, i32, i32, i32
  }
}

module attributes {stable_mosaic.version = 11 : i64} {
  func.func @_residual_matmul_kernel(%arg0: i32, %arg1: memref<16x32xf32, #tpu.memory_space<vmem>>, %arg2: memref<16x32xf32, #tpu.memory_space<vmem>>, %arg3: memref<32x32xf32, #tpu.memory_space<vmem>>, %arg4: memref<1x32xf32, #tpu.memory_space<vmem>>, %arg5: memref<16x32xf32, #tpu.memory_space<vmem>>) attributes {dimension_semantics = [#tpu.dimension_semantics<parallel>], iteration_bounds = array<i64: 1>, scalar_prefetch = 0 : i64, scratch_operands = 0 : i64, tpu.core_type = #tpu.core_type<tc>, window_params = [{transform_indices = @transform_0, window_bounds = array<i64: 16, 32>}, {transform_indices = @transform_1, window_bounds = array<i64: 16, 32>}, {pipeline_mode = #tpu.pipeline_mode<synchronous>, transform_indices = @transform_2, window_bounds = array<i64: 32, 32>}, {pipeline_mode = #tpu.pipeline_mode<synchronous>, transform_indices = @transform_3, window_bounds = array<i64: 1, 32>}, {transform_indices = @transform_4, window_bounds = array<i64: 16, 32>}]} {
    %c0 = arith.constant 0 : index
    %c0_0 = arith.constant 0 : index
    %0 = vector.load %arg2[%c0, %c0_0] : memref<16x32xf32, #tpu.memory_space<vmem>>, vector<16x32xf32>
    %c0_1 = arith.constant 0 : index
    %c0_2 = arith.constant 0 : index
    %1 = vector.load %arg3[%c0_1, %c0_2] : memref<32x32xf32, #tpu.memory_space<vmem>>, vector<32x32xf32>
    %cst = arith.constant dense<0.000000e+00> : vector<16x32xf32>
    %2 = tpu.matmul %0, %1, %cst {dimension_numbers = #tpu.dot_dimension_numbers<[1], [0], [0], [1], [0, 0, 1, 1], [], []>} : vector<16x32xf32>, vector<32x32xf32>, vector<16x32xf32> -> vector<16x32xf32>
    %c0_3 = arith.constant 0 : index
    %c0_4 = arith.constant 0 : index
    %3 = vector.load %arg4[%c0_3, %c0_4] : memref<1x32xf32, #tpu.memory_space<vmem>>, vector<1x32xf32>
    %4 = vector.broadcast %3 : vector<1x32xf32> to vector<16x32xf32>
    %5 = arith.addf %2, %4 : vector<16x32xf32>
    %c0_5 = arith.constant 0 : index
    %c0_6 = arith.constant 0 : index
    %6 = vector.load %arg1[%c0_5, %c0_6] : memref<16x32xf32, #tpu.memory_space<vmem>>, vector<16x32xf32>
    %7 = arith.addf %6, %5 : vector<16x32xf32>
    %c0_7 = arith.constant 0 : index
    %c0_8 = arith.constant 0 : index
    %8 = vector.load %arg5[%c0_7, %c0_8] : memref<16x32xf32, #tpu.memory_space<vmem>>, vector<16x32xf32>
    tpu.vector_store %arg5[%c0_7, %c0_8], %7 {strides = array<i32>} : memref<16x32xf32, #tpu.memory_space<vmem>>, vector<16x32xf32>,
    return
  }
  func.func @transform_0(%arg0: i32) -> (i32, i32) {
    %c0_i32 = arith.constant 0 : i32
    %c0_i32_0 = arith.constant 0 : i32
    return %arg0, %c0_i32 : i32, i32
  }
  func.func @transform_1(%arg0: i32) -> (i32, i32) {
    %c0_i32 = arith.constant 0 : i32
    %c0_i32_0 = arith.constant 0 : i32
    return %arg0, %c0_i32 : i32, i32
  }
  func.func @transform_2(%arg0: i32) -> (i32, i32) {
    %c0_i32 = arith.constant 0 : i32
    %c0_i32_0 = arith.constant 0 : i32
    %c0_i32_1 = arith.constant 0 : i32
    return %c0_i32, %c0_i32_0 : i32, i32
  }
  func.func @transform_3(%arg0: i32) -> (i32, i32) {
    %c0_i32 = arith.constant 0 : i32
    %c0_i32_0 = arith.constant 0 : i32
    %c0_i32_1 = arith.constant 0 : i32
    return %c0_i32, %c0_i32_0 : i32, i32
  }
  func.func @transform_4(%arg0: i32) -> (i32, i32) {
    %c0_i32 = arith.constant 0 : i32
    %c0_i32_0 = arith.constant 0 : i32
    return %arg0, %c0_i32 : i32, i32
  }
}

module attributes {stable_mosaic.version = 11 : i64} {
  func.func @_ln_swiglu_kernel(%arg0: i32, %arg1: memref<16x32xf32, #tpu.memory_space<vmem>>, %arg2: memref<1x32xf32, #tpu.memory_space<vmem>>, %arg3: memref<1x32xf32, #tpu.memory_space<vmem>>, %arg4: memref<32x64xf32, #tpu.memory_space<vmem>>, %arg5: memref<1x64xf32, #tpu.memory_space<vmem>>, %arg6: memref<32x64xf32, #tpu.memory_space<vmem>>, %arg7: memref<1x64xf32, #tpu.memory_space<vmem>>, %arg8: memref<64x32xf32, #tpu.memory_space<vmem>>, %arg9: memref<1x32xf32, #tpu.memory_space<vmem>>, %arg10: memref<16x32xf32, #tpu.memory_space<vmem>>) attributes {dimension_semantics = [#tpu.dimension_semantics<parallel>], iteration_bounds = array<i64: 1>, scalar_prefetch = 0 : i64, scratch_operands = 0 : i64, tpu.core_type = #tpu.core_type<tc>, window_params = [{transform_indices = @transform_0, window_bounds = array<i64: 16, 32>}, {pipeline_mode = #tpu.pipeline_mode<synchronous>, transform_indices = @transform_1, window_bounds = array<i64: 1, 32>}, {pipeline_mode = #tpu.pipeline_mode<synchronous>, transform_indices = @transform_2, window_bounds = array<i64: 1, 32>}, {pipeline_mode = #tpu.pipeline_mode<synchronous>, transform_indices = @transform_3, window_bounds = array<i64: 32, 64>}, {pipeline_mode = #tpu.pipeline_mode<synchronous>, transform_indices = @transform_4, window_bounds = array<i64: 1, 64>}, {pipeline_mode = #tpu.pipeline_mode<synchronous>, transform_indices = @transform_5, window_bounds = array<i64: 32, 64>}, {pipeline_mode = #tpu.pipeline_mode<synchronous>, transform_indices = @transform_6, window_bounds = array<i64: 1, 64>}, {pipeline_mode = #tpu.pipeline_mode<synchronous>, transform_indices = @transform_7, window_bounds = array<i64: 64, 32>}, {pipeline_mode = #tpu.pipeline_mode<synchronous>, transform_indices = @transform_8, window_bounds = array<i64: 1, 32>}, {transform_indices = @transform_9, window_bounds = array<i64: 16, 32>}]} {
    %c0 = arith.constant 0 : index
    %c0_0 = arith.constant 0 : index
    %0 = vector.load %arg1[%c0, %c0_0] : memref<16x32xf32, #tpu.memory_space<vmem>>, vector<16x32xf32>
    %cst = arith.constant dense<0.000000e+00> : vector<16xf32>
    %1 = vector.multi_reduction <add>, %0, %cst [1] : vector<16x32xf32> to vector<16xf32>
    %2 = vector.shape_cast %1 : vector<16xf32> to vector<16x1xf32>
    %cst_1 = arith.constant 3.200000e+01 : f32
    %3 = vector.broadcast %cst_1 : f32 to vector<16x1xf32>
    %4 = arith.divf %2, %3 : vector<16x1xf32>
    %5 = vector.broadcast %4 : vector<16x1xf32> to vector<16x32xf32>
    %6 = arith.subf %0, %5 : vector<16x32xf32>
    %7 = arith.mulf %6, %6 : vector<16x32xf32>
    %cst_2 = arith.constant dense<0.000000e+00> : vector<16xf32>
    %8 = vector.multi_reduction <add>, %7, %cst_2 [1] : vector<16x32xf32> to vector<16xf32>
    %9 = vector.shape_cast %8 : vector<16xf32> to vector<16x1xf32>
    %cst_3 = arith.constant 3.200000e+01 : f32
    %10 = vector.broadcast %cst_3 : f32 to vector<16x1xf32>
    %11 = arith.divf %9, %10 : vector<16x1xf32>
    %12 = vector.broadcast %4 : vector<16x1xf32> to vector<16x32xf32>
    %13 = arith.subf %0, %12 : vector<16x32xf32>
    %cst_4 = arith.constant 9.99999974E-6 : f32
    %14 = vector.broadcast %cst_4 : f32 to vector<16x1xf32>
    %15 = arith.addf %11, %14 : vector<16x1xf32>
    %16 = math.rsqrt %15 : vector<16x1xf32>
    %17 = vector.broadcast %16 : vector<16x1xf32> to vector<16x32xf32>
    %18 = arith.mulf %13, %17 : vector<16x32xf32>
    %c0_5 = arith.constant 0 : index
    %c0_6 = arith.constant 0 : index
    %19 = vector.load %arg2[%c0_5, %c0_6] : memref<1x32xf32, #tpu.memory_space<vmem>>, vector<1x32xf32>
    %20 = vector.broadcast %19 : vector<1x32xf32> to vector<16x32xf32>
    %21 = arith.mulf %18, %20 : vector<16x32xf32>
    %c0_7 = arith.constant 0 : index
    %c0_8 = arith.constant 0 : index
    %22 = vector.load %arg3[%c0_7, %c0_8] : memref<1x32xf32, #tpu.memory_space<vmem>>, vector<1x32xf32>
    %23 = vector.broadcast %22 : vector<1x32xf32> to vector<16x32xf32>
    %24 = arith.addf %21, %23 : vector<16x32xf32>
    %c0_9 = arith.constant 0 : index
    %c0_10 = arith.constant 0 : index
    %25 = vector.load %arg4[%c0_9, %c0_10] : memref<32x64xf32, #tpu.memory_space<vmem>>, vector<32x64xf32>
    %cst_11 = arith.constant dense<0.000000e+00> : vector<16x64xf32>
    %26 = tpu.matmul %24, %25, %cst_11 {dimension_numbers = #tpu.dot_dimension_numbers<[1], [0], [0], [1], [0, 0, 1, 1], [], []>} : vector<16x32xf32>, vector<32x64xf32>, vector<16x64xf32> -> vector<16x64xf32>
    %c0_12 = arith.constant 0 : index
    %c0_13 = arith.constant 0 : index
    %27 = vector.load %arg5[%c0_12, %c0_13] : memref<1x64xf32, #tpu.memory_space<vmem>>, vector<1x64xf32>
    %28 = vector.broadcast %27 : vector<1x64xf32> to vector<16x64xf32>
    %29 = arith.addf %26, %28 : vector<16x64xf32>
    %c0_14 = arith.constant 0 : index
    %c0_15 = arith.constant 0 : index
    %30 = vector.load %arg6[%c0_14, %c0_15] : memref<32x64xf32, #tpu.memory_space<vmem>>, vector<32x64xf32>
    %cst_16 = arith.constant dense<0.000000e+00> : vector<16x64xf32>
    %31 = tpu.matmul %24, %30, %cst_16 {dimension_numbers = #tpu.dot_dimension_numbers<[1], [0], [0], [1], [0, 0, 1, 1], [], []>} : vector<16x32xf32>, vector<32x64xf32>, vector<16x64xf32> -> vector<16x64xf32>
    %c0_17 = arith.constant 0 : index
    %c0_18 = arith.constant 0 : index
    %32 = vector.load %arg7[%c0_17, %c0_18] : memref<1x64xf32, #tpu.memory_space<vmem>>, vector<1x64xf32>
    %33 = vector.broadcast %32 : vector<1x64xf32> to vector<16x64xf32>
    %34 = arith.addf %31, %33 : vector<16x64xf32>
    %35 = arith.negf %29 : vector<16x64xf32>
    %36 = math.exp %35 : vector<16x64xf32>
    %cst_19 = arith.constant 1.000000e+00 : f32
    %37 = vector.broadcast %cst_19 : f32 to vector<16x64xf32>
    %38 = arith.addf %37, %36 : vector<16x64xf32>
    %39 = arith.divf %37, %38 : vector<16x64xf32>
    %40 = arith.mulf %29, %39 : vector<16x64xf32>
    %41 = arith.mulf %40, %34 : vector<16x64xf32>
    %c0_20 = arith.constant 0 : index
    %c0_21 = arith.constant 0 : index
    %42 = vector.load %arg8[%c0_20, %c0_21] : memref<64x32xf32, #tpu.memory_space<vmem>>, vector<64x32xf32>
    %cst_22 = arith.constant dense<0.000000e+00> : vector<16x32xf32>
    %43 = tpu.matmul %41, %42, %cst_22 {dimension_numbers = #tpu.dot_dimension_numbers<[1], [0], [0], [1], [0, 0, 1, 1], [], []>} : vector<16x64xf32>, vector<64x32xf32>, vector<16x32xf32> -> vector<16x32xf32>
    %c0_23 = arith.constant 0 : index
    %c0_24 = arith.constant 0 : index
    %44 = vector.load %arg9[%c0_23, %c0_24] : memref<1x32xf32, #tpu.memory_space<vmem>>, vector<1x32xf32>
    %45 = vector.broadcast %44 : vector<1x32xf32> to vector<16x32xf32>
    %46 = arith.addf %43, %45 : vector<16x32xf32>
    %47 = arith.addf %0, %46 : vector<16x32xf32>
    %c0_25 = arith.constant 0 : index
    %c0_26 = arith.constant 0 : index
    %48 = vector.load %arg10[%c0_25, %c0_26] : memref<16x32xf32, #tpu.memory_space<vmem>>, vector<16x32xf32>
    tpu.vector_store %arg10[%c0_25, %c0_26], %47 {strides = array<i32>} : memref<16x32xf32, #tpu.memory_space<vmem>>, vector<16x32xf32>,
    return
  }
  func.func @transform_0(%arg0: i32) -> (i32, i32) {
    %c0_i32 = arith.constant 0 : i32
    %c0_i32_0 = arith.constant 0 : i32
    return %arg0, %c0_i32 : i32, i32
  }
  func.func @transform_1(%arg0: i32) -> (i32, i32) {
    %c0_i32 = arith.constant 0 : i32
    %c0_i32_0 = arith.constant 0 : i32
    %c0_i32_1 = arith.constant 0 : i32
    return %c0_i32, %c0_i32_0 : i32, i32
  }
  func.func @transform_2(%arg0: i32) -> (i32, i32) {
    %c0_i32 = arith.constant 0 : i32
    %c0_i32_0 = arith.constant 0 : i32
    %c0_i32_1 = arith.constant 0 : i32
    return %c0_i32, %c0_i32_0 : i32, i32
  }
  func.func @transform_3(%arg0: i32) -> (i32, i32) {
    %c0_i32 = arith.constant 0 : i32
    %c0_i32_0 = arith.constant 0 : i32
    %c0_i32_1 = arith.constant 0 : i32
    return %c0_i32, %c0_i32_0 : i32, i32
  }
  func.func @transform_4(%arg0: i32) -> (i32, i32) {
    %c0_i32 = arith.constant 0 : i32
    %c0_i32_0 = arith.constant 0 : i32
    %c0_i32_1 = arith.constant 0 : i32
    return %c0_i32, %c0_i32_0 : i32, i32
  }
  func.func @transform_5(%arg0: i32) -> (i32, i32) {
    %c0_i32 = arith.constant 0 : i32
    %c0_i32_0 = arith.constant 0 : i32
    %c0_i32_1 = arith.constant 0 : i32
    return %c0_i32, %c0_i32_0 : i32, i32
  }
  func.func @transform_6(%arg0: i32) -> (i32, i32) {
    %c0_i32 = arith.constant 0 : i32
    %c0_i32_0 = arith.constant 0 : i32
    %c0_i32_1 = arith.constant 0 : i32
    return %c0_i32, %c0_i32_0 : i32, i32
  }
  func.func @transform_7(%arg0: i32) -> (i32, i32) {
    %c0_i32 = arith.constant 0 : i32
    %c0_i32_0 = arith.constant 0 : i32
    %c0_i32_1 = arith.constant 0 : i32
    return %c0_i32, %c0_i32_0 : i32, i32
  }
  func.func @transform_8(%arg0: i32) -> (i32, i32) {
    %c0_i32 = arith.constant 0 : i32
    %c0_i32_0 = arith.constant 0 : i32
    %c0_i32_1 = arith.constant 0 : i32
    return %c0_i32, %c0_i32_0 : i32, i32
  }
  func.func @transform_9(%arg0: i32) -> (i32, i32) {
    %c0_i32 = arith.constant 0 : i32
    %c0_i32_0 = arith.constant 0 : i32
    return %arg0, %c0_i32 : i32, i32
  }
}

module attributes {stable_mosaic.version = 11 : i64} {
  func.func @_ln_swiglu_kernel(%arg0: i32, %arg1: memref<16x32xf32, #tpu.memory_space<vmem>>, %arg2: memref<1x32xf32, #tpu.memory_space<vmem>>, %arg3: memref<1x32xf32, #tpu.memory_space<vmem>>, %arg4: memref<32x64xf32, #tpu.memory_space<vmem>>, %arg5: memref<1x64xf32, #tpu.memory_space<vmem>>, %arg6: memref<32x64xf32, #tpu.memory_space<vmem>>, %arg7: memref<1x64xf32, #tpu.memory_space<vmem>>, %arg8: memref<64x32xf32, #tpu.memory_space<vmem>>, %arg9: memref<1x32xf32, #tpu.memory_space<vmem>>, %arg10: memref<16x32xf32, #tpu.memory_space<vmem>>) attributes {dimension_semantics = [#tpu.dimension_semantics<parallel>], iteration_bounds = array<i64: 1>, scalar_prefetch = 0 : i64, scratch_operands = 0 : i64, tpu.core_type = #tpu.core_type<tc>, window_params = [{transform_indices = @transform_0, window_bounds = array<i64: 16, 32>}, {pipeline_mode = #tpu.pipeline_mode<synchronous>, transform_indices = @transform_1, window_bounds = array<i64: 1, 32>}, {pipeline_mode = #tpu.pipeline_mode<synchronous>, transform_indices = @transform_2, window_bounds = array<i64: 1, 32>}, {pipeline_mode = #tpu.pipeline_mode<synchronous>, transform_indices = @transform_3, window_bounds = array<i64: 32, 64>}, {pipeline_mode = #tpu.pipeline_mode<synchronous>, transform_indices = @transform_4, window_bounds = array<i64: 1, 64>}, {pipeline_mode = #tpu.pipeline_mode<synchronous>, transform_indices = @transform_5, window_bounds = array<i64: 32, 64>}, {pipeline_mode = #tpu.pipeline_mode<synchronous>, transform_indices = @transform_6, window_bounds = array<i64: 1, 64>}, {pipeline_mode = #tpu.pipeline_mode<synchronous>, transform_indices = @transform_7, window_bounds = array<i64: 64, 32>}, {pipeline_mode = #tpu.pipeline_mode<synchronous>, transform_indices = @transform_8, window_bounds = array<i64: 1, 32>}, {transform_indices = @transform_9, window_bounds = array<i64: 16, 32>}]} {
    %c0 = arith.constant 0 : index
    %c0_0 = arith.constant 0 : index
    %0 = vector.load %arg1[%c0, %c0_0] : memref<16x32xf32, #tpu.memory_space<vmem>>, vector<16x32xf32>
    %cst = arith.constant dense<0.000000e+00> : vector<16xf32>
    %1 = vector.multi_reduction <add>, %0, %cst [1] : vector<16x32xf32> to vector<16xf32>
    %2 = vector.shape_cast %1 : vector<16xf32> to vector<16x1xf32>
    %cst_1 = arith.constant 3.200000e+01 : f32
    %3 = vector.broadcast %cst_1 : f32 to vector<16x1xf32>
    %4 = arith.divf %2, %3 : vector<16x1xf32>
    %5 = vector.broadcast %4 : vector<16x1xf32> to vector<16x32xf32>
    %6 = arith.subf %0, %5 : vector<16x32xf32>
    %7 = arith.mulf %6, %6 : vector<16x32xf32>
    %cst_2 = arith.constant dense<0.000000e+00> : vector<16xf32>
    %8 = vector.multi_reduction <add>, %7, %cst_2 [1] : vector<16x32xf32> to vector<16xf32>
    %9 = vector.shape_cast %8 : vector<16xf32> to vector<16x1xf32>
    %cst_3 = arith.constant 3.200000e+01 : f32
    %10 = vector.broadcast %cst_3 : f32 to vector<16x1xf32>
    %11 = arith.divf %9, %10 : vector<16x1xf32>
    %12 = vector.broadcast %4 : vector<16x1xf32> to vector<16x32xf32>
    %13 = arith.subf %0, %12 : vector<16x32xf32>
    %cst_4 = arith.constant 9.99999974E-6 : f32
    %14 = vector.broadcast %cst_4 : f32 to vector<16x1xf32>
    %15 = arith.addf %11, %14 : vector<16x1xf32>
    %16 = math.rsqrt %15 : vector<16x1xf32>
    %17 = vector.broadcast %16 : vector<16x1xf32> to vector<16x32xf32>
    %18 = arith.mulf %13, %17 : vector<16x32xf32>
    %c0_5 = arith.constant 0 : index
    %c0_6 = arith.constant 0 : index
    %19 = vector.load %arg2[%c0_5, %c0_6] : memref<1x32xf32, #tpu.memory_space<vmem>>, vector<1x32xf32>
    %20 = vector.broadcast %19 : vector<1x32xf32> to vector<16x32xf32>
    %21 = arith.mulf %18, %20 : vector<16x32xf32>
    %c0_7 = arith.constant 0 : index
    %c0_8 = arith.constant 0 : index
    %22 = vector.load %arg3[%c0_7, %c0_8] : memref<1x32xf32, #tpu.memory_space<vmem>>, vector<1x32xf32>
    %23 = vector.broadcast %22 : vector<1x32xf32> to vector<16x32xf32>
    %24 = arith.addf %21, %23 : vector<16x32xf32>
    %c0_9 = arith.constant 0 : index
    %c0_10 = arith.constant 0 : index
    %25 = vector.load %arg4[%c0_9, %c0_10] : memref<32x64xf32, #tpu.memory_space<vmem>>, vector<32x64xf32>
    %cst_11 = arith.constant dense<0.000000e+00> : vector<16x64xf32>
    %26 = tpu.matmul %24, %25, %cst_11 {dimension_numbers = #tpu.dot_dimension_numbers<[1], [0], [0], [1], [0, 0, 1, 1], [], []>} : vector<16x32xf32>, vector<32x64xf32>, vector<16x64xf32> -> vector<16x64xf32>
    %c0_12 = arith.constant 0 : index
    %c0_13 = arith.constant 0 : index
    %27 = vector.load %arg5[%c0_12, %c0_13] : memref<1x64xf32, #tpu.memory_space<vmem>>, vector<1x64xf32>
    %28 = vector.broadcast %27 : vector<1x64xf32> to vector<16x64xf32>
    %29 = arith.addf %26, %28 : vector<16x64xf32>
    %c0_14 = arith.constant 0 : index
    %c0_15 = arith.constant 0 : index
    %30 = vector.load %arg6[%c0_14, %c0_15] : memref<32x64xf32, #tpu.memory_space<vmem>>, vector<32x64xf32>
    %cst_16 = arith.constant dense<0.000000e+00> : vector<16x64xf32>
    %31 = tpu.matmul %24, %30, %cst_16 {dimension_numbers = #tpu.dot_dimension_numbers<[1], [0], [0], [1], [0, 0, 1, 1], [], []>} : vector<16x32xf32>, vector<32x64xf32>, vector<16x64xf32> -> vector<16x64xf32>
    %c0_17 = arith.constant 0 : index
    %c0_18 = arith.constant 0 : index
    %32 = vector.load %arg7[%c0_17, %c0_18] : memref<1x64xf32, #tpu.memory_space<vmem>>, vector<1x64xf32>
    %33 = vector.broadcast %32 : vector<1x64xf32> to vector<16x64xf32>
    %34 = arith.addf %31, %33 : vector<16x64xf32>
    %35 = arith.negf %29 : vector<16x64xf32>
    %36 = math.exp %35 : vector<16x64xf32>
    %cst_19 = arith.constant 1.000000e+00 : f32
    %37 = vector.broadcast %cst_19 : f32 to vector<16x64xf32>
    %38 = arith.addf %37, %36 : vector<16x64xf32>
    %39 = arith.divf %37, %38 : vector<16x64xf32>
    %40 = arith.mulf %29, %39 : vector<16x64xf32>
    %41 = arith.mulf %40, %34 : vector<16x64xf32>
    %c0_20 = arith.constant 0 : index
    %c0_21 = arith.constant 0 : index
    %42 = vector.load %arg8[%c0_20, %c0_21] : memref<64x32xf32, #tpu.memory_space<vmem>>, vector<64x32xf32>
    %cst_22 = arith.constant dense<0.000000e+00> : vector<16x32xf32>
    %43 = tpu.matmul %41, %42, %cst_22 {dimension_numbers = #tpu.dot_dimension_numbers<[1], [0], [0], [1], [0, 0, 1, 1], [], []>} : vector<16x64xf32>, vector<64x32xf32>, vector<16x32xf32> -> vector<16x32xf32>
    %c0_23 = arith.constant 0 : index
    %c0_24 = arith.constant 0 : index
    %44 = vector.load %arg9[%c0_23, %c0_24] : memref<1x32xf32, #tpu.memory_space<vmem>>, vector<1x32xf32>
    %45 = vector.broadcast %44 : vector<1x32xf32> to vector<16x32xf32>
    %46 = arith.addf %43, %45 : vector<16x32xf32>
    %47 = arith.addf %0, %46 : vector<16x32xf32>
    %c0_25 = arith.constant 0 : index
    %c0_26 = arith.constant 0 : index
    %48 = vector.load %arg10[%c0_25, %c0_26] : memref<16x32xf32, #tpu.memory_space<vmem>>, vector<16x32xf32>
    tpu.vector_store %arg10[%c0_25, %c0_26], %47 {strides = array<i32>} : memref<16x32xf32, #tpu.memory_space<vmem>>, vector<16x32xf32>,
    return
  }
  func.func @transform_0(%arg0: i32) -> (i32, i32) {
    %c0_i32 = arith.constant 0 : i32
    %c0_i32_0 = arith.constant 0 : i32
    return %arg0, %c0_i32 : i32, i32
  }
  func.func @transform_1(%arg0: i32) -> (i32, i32) {
    %c0_i32 = arith.constant 0 : i32
    %c0_i32_0 = arith.constant 0 : i32
    %c0_i32_1 = arith.constant 0 : i32
    return %c0_i32, %c0_i32_0 : i32, i32
  }
  func.func @transform_2(%arg0: i32) -> (i32, i32) {
    %c0_i32 = arith.constant 0 : i32
    %c0_i32_0 = arith.constant 0 : i32
    %c0_i32_1 = arith.constant 0 : i32
    return %c0_i32, %c0_i32_0 : i32, i32
  }
  func.func @transform_3(%arg0: i32) -> (i32, i32) {
    %c0_i32 = arith.constant 0 : i32
    %c0_i32_0 = arith.constant 0 : i32
    %c0_i32_1 = arith.constant 0 : i32
    return %c0_i32, %c0_i32_0 : i32, i32
  }
  func.func @transform_4(%arg0: i32) -> (i32, i32) {
    %c0_i32 = arith.constant 0 : i32
    %c0_i32_0 = arith.constant 0 : i32
    %c0_i32_1 = arith.constant 0 : i32
    return %c0_i32, %c0_i32_0 : i32, i32
  }
  func.func @transform_5(%arg0: i32) -> (i32, i32) {
    %c0_i32 = arith.constant 0 : i32
    %c0_i32_0 = arith.constant 0 : i32
    %c0_i32_1 = arith.constant 0 : i32
    return %c0_i32, %c0_i32_0 : i32, i32
  }
  func.func @transform_6(%arg0: i32) -> (i32, i32) {
    %c0_i32 = arith.constant 0 : i32
    %c0_i32_0 = arith.constant 0 : i32
    %c0_i32_1 = arith.constant 0 : i32
    return %c0_i32, %c0_i32_0 : i32, i32
  }
  func.func @transform_7(%arg0: i32) -> (i32, i32) {
    %c0_i32 = arith.constant 0 : i32
    %c0_i32_0 = arith.constant 0 : i32
    %c0_i32_1 = arith.constant 0 : i32
    return %c0_i32, %c0_i32_0 : i32, i32
  }
  func.func @transform_8(%arg0: i32) -> (i32, i32) {
    %c0_i32 = arith.constant 0 : i32
    %c0_i32_0 = arith.constant 0 : i32
    %c0_i32_1 = arith.constant 0 : i32
    return %c0_i32, %c0_i32_0 : i32, i32
  }
  func.func @transform_9(%arg0: i32) -> (i32, i32) {
    %c0_i32 = arith.constant 0 : i32
    %c0_i32_0 = arith.constant 0 : i32
    return %arg0, %c0_i32 : i32, i32
  }
}

</mosaic_0001>

<bundles_post_ra>
// kernel: all_atom_decoder_forward.12
= control target key start
LH: loop header
LB: loop body
LE: loop exit
PB: predicated region body
PF: predicated region fallthrough
CT: control target
= control target key end

     0   :  { %vm25_vm0 = vcmask 130048   ;;  %vm107_vm1 = vcmask 261120   ;;  %s173_s1 = inlined_call_operand.vmem [shape: f32[16,32], index: 1, kind: input, shape index: {}]   ;;  %s174_s0 = inlined_call_operand.vmem [shape: f32[16,16], index: 0, kind: input, shape index: {}]   ;;  %s175_s2 = inlined_call_operand.vmem [shape: f32[1,32], index: 2, kind: input, shape index: {}]   ;;  %s176_s3 = inlined_call_operand.vmem [shape: f32[16,32], index: 3, kind: output, shape index: {}]  }
   0x1   :  { %v16_v0 = vld [vmem:[%s173_s1] sm:$0xff]  ;;  %v17_v1 = vld [vmem:[%s173_s1 + $0x8] sm:$0xff] }
   0x2   :  { %v14_v2 = vld [vmem:[%s174_s0] sm:$0xff]  ;;  %v128_v3 = vpack.c.bf16 %v17_v1, %v16_v0  ;;  %v15_v4 = vld [vmem:[%s174_s0 + $0x8] sm:$0xff] }
   0x3   :  { %125 = vmatprep.mubr.msk.f32.mxu0 %vm25_vm0, %v14_v2  ;;  %v114_v5 = vld [vmem:[%s175_s2] ss:$0 sm:$0xff] }
   0x4   :  { %129 = vmatprep.subr.bf16.mxu0 %v128_v3 }
   0x5   :  { %131 = vmatpush3.bf16.msra.mxu0 %v128_v3 }
   0x8   :  { %126 = vmatmul.mubr.msk.f32.vlgmr.msra.gmra.mrb[0].mxu0 %vm25_vm0, %v15_v4 }
  0xdb   :  { %v127_v6 = vpop.f32.mrb[0].mxu0 }
  0xdc   :  { %v104_v7 = vadd.f32 %v127_v6, %v114_v5  ;;  %v98_v8 = vpop.f32.mrb[1].mxu0 }
  0xdd   :  { %v99_v9 = vadd.f32 %v114_v5, %v98_v8 }
  0xde   :  { %109 = vst.msk [vmem:[%s176_s3 + $0x8] sm:$0xff] %vm107_vm1, %v104_v7 }
  0xdf   :  { %108 = vst.msk [vmem:[%s176_s3] sm:$0xff] %vm107_vm1, %v99_v9 }

// kernel: all_atom_decoder_forward.13
= control target key start
LH: loop header
LB: loop body
LE: loop exit
PB: predicated region body
PF: predicated region fallthrough
CT: control target
= control target key end

     0   :  { %vm24_vm0 = vcmask 64512   ;;  %vm106_vm1 = vcmask 130048   ;;  %s162_s1 = inlined_call_operand.vmem [shape: f32[8,16], index: 1, kind: input, shape index: {}]   ;;  %s163_s0 = inlined_call_operand.vmem [shape: f32[16,8], index: 0, kind: input, shape index: {}]   ;;  %s164_s2 = inlined_call_operand.vmem [shape: f32[1,16], index: 2, kind: input, shape index: {}]   ;;  %s165_s3 = inlined_call_operand.vmem [shape: f32[16,16], index: 3, kind: output, shape index: {}]  }
   0x1   :  { %v16_v0 = vld [vmem:[%s162_s1] sm:$0xff]  ;;  %v15_v2 = vld [vmem:[%s163_s0 + $0x8] sm:$0xff] }
   0x2   :  { %v14_v1 = vld [vmem:[%s163_s0] sm:$0xff]  ;;  %119 = vmatprep.subr.mxu0 %v16_v0 }
   0x3   :  { %121 = vmatprep.mubr.msk.f32.mxu0 %vm24_vm0, %v14_v1  ;;  %120 = vmatpush3.msra.mxu0 %v16_v0  ;;  %v113_v3 = vld [vmem:[%s164_s2] ss:$0 sm:$0xff] }
   0x4   :  { %122 = vmatmul.mubr.msk.f32.vlgmr.msra.gmra.mrb[0].mxu0 %vm24_vm0, %v15_v2 }
  0xd7   :  { %v123_v4 = vpop.f32.mrb[0].mxu0 }
  0xd8   :  { %v103_v5 = vadd.f32 %v123_v4, %v113_v3  ;;  %v97_v6 = vpop.f32.mrb[1].mxu0 }
  0xd9   :  { %v98_v7 = vadd.f32 %v113_v3, %v97_v6 }
  0xda   :  { %108 = vst.msk [vmem:[%s165_s3 + $0x8] sm:$0xff] %vm106_vm1, %v103_v5 }
  0xdb   :  { %107 = vst.msk [vmem:[%s165_s3] sm:$0xff] %vm106_vm1, %v98_v7 }

// kernel: all_atom_decoder_forward.16
= control target key start
LH: loop header
LB: loop body
LE: loop exit
PB: predicated region body
PF: predicated region fallthrough
CT: control target
= control target key end

     0   :  { %vm22_vm0 = vcmask 261120   ;;  %vm160_vm1 = vcmask 785408   ;;  %s270_s0 = inlined_call_operand.vmem [shape: f32[16,32], index: 0, kind: input, shape index: {}]   ;;  %s271_s3 = inlined_call_operand.vmem [shape: f32[32,96], index: 3, kind: input, shape index: {}]   ;;  %s272_s1 = inlined_call_operand.vmem [shape: f32[1,32], index: 1, kind: input, shape index: {}]   ;;  %s273_s2 = inlined_call_operand.vmem [shape: f32[1,32], index: 2, kind: input, shape index: {}]   ;;  %s274_s4 = inlined_call_operand.vmem [shape: f32[1,96], index: 4, kind: input, shape index: {}]   ;;  %s275_s5 = inlined_call_operand.vmem [shape: f32[16,96], index: 5, kind: output, shape index: {}]  }
   0x1   :  { %v20_v0 = vld [vmem:[%s270_s0] sm:$0xff]  ;;  %v21_v1 = vld [vmem:[%s270_s0 + $0x8] sm:$0xff]  ;;  %v70_v16 = vld [vmem:[%s271_s3 + $0x10] sm:$0xff] }
   0x2   :  { %v23_v2 = vsel %vm22_vm0, %v20_v0, 0.0  ;;  %v26_v3 = vsel %vm22_vm0, %v21_v1, 0.0  ;;  %v68_v14 = vld [vmem:[%s271_s3] sm:$0xff]  ;;  %v69_v15 = vld [vmem:[%s271_s3 + $0x8] sm:$0xff]  ;;  %v71_v18 = vld [vmem:[%s271_s3 + $0x18] sm:$0xff] }
   0x3   :  { %24 = vadd.xlane.f32.xlu0 %v23_v2  ;;  %v189_v17 = vpack.c.bf16 %v69_v15, %v68_v14  ;;  %v193_v19 = vpack.c.bf16 %v71_v18, %v70_v16  ;;  %v167_v27 = vld [vmem:[%s272_s1] ss:$0 sm:$0xff] }
   0x4   :  { %v168_v29 = vld [vmem:[%s273_s2] ss:$0 sm:$0xff] }
   0x5   :  { %190 = vmatprep.subr.bf16.mxu0 %v189_v17  ;;  %v169_v36 = vld [vmem:[%s274_s4] ss:$0 sm:$0xff] }
   0x6   :  { %192 = vmatpush3.bf16.msra.mxu0 %v189_v17 }
   0x7   :  { %27 = vadd.xlane.f32.xlu0 %v26_v3  ;;  %194 = vmatprep.subr.bf16.mxu0 %v193_v19 }
   0xa   :  { %196 = vmatpush3.bf16.msra.mxu0 %v193_v19 }
  0x90   :  { %v25_v4 = vpop.xlane.xlu0 %24 }
  0x91   :  { %v30_v5 = vmul.f32 0.03125, %v25_v4 }
  0x93   :  { %v32_v6 = vsub.f32 %v20_v0, %v30_v5 }
  0x94   :  { %v28_v7 = vpop.xlane.xlu0 %27 }
  0x95   :  { %v31_v8 = vmul.f32 0.03125, %v28_v7  ;;  %v34_v9 = vmul.f32 %v32_v6, %v32_v6 }
  0x97   :  { %v33_v10 = vsub.f32 %v21_v1, %v31_v8  ;;  %v36_v11 = vsel %vm22_vm0, %v34_v9, 0.0 }
  0x98   :  { %37 = vadd.xlane.f32.xlu1 %v36_v11 }
  0x99   :  { %v35_v12 = vmul.f32 %v33_v10, %v33_v10 }
  0x9b   :  { %v39_v13 = vsel %vm22_vm0, %v35_v12, 0.0 }
  0x9c   :  { %40 = vadd.xlane.f32.xlu1 %v39_v13 }
 0x125   :  { %v38_v20 = vpop.xlane.xlu1 %37 }
 0x126   :  { %v42_v21 = vmul.f32 0.03125, %v38_v20 }
 0x128   :  { %v44_v22 = vadd.f32 1e-05, %v42_v21 }
 0x129   :  { %v41_v23 = vpop.xlane.xlu1 %40 }
 0x12a   :  { %197 = vrsqrt.f32 %v44_v22  ;;  %v43_v24 = vmul.f32 0.03125, %v41_v23 }
 0x12c   :  { %v45_v25 = vadd.f32 1e-05, %v43_v24 }
 0x12e   :  { %199 = vrsqrt.f32 %v45_v25 }
 0x134   :  { %v198_v26 = vpop.eup %197 }
 0x135   :  { %v48_v28 = vmul.f32 %v198_v26, %v32_v6 }
 0x137   :  { %v57_v30 = vmul.f32 %v167_v27, %v48_v28 }
 0x138   :  { %v200_v31 = vpop.eup %199 }
 0x139   :  { %v49_v32 = vmul.f32 %v200_v31, %v33_v10  ;;  %v66_v33 = vadd.f32 %v168_v29, %v57_v30 }
 0x13b   :  { %v58_v34 = vmul.f32 %v167_v27, %v49_v32  ;;  %186 = vmatprep.mubr.msk.f32.mxu0 %vm22_vm0, %v66_v33 }
 0x13d   :  { %v67_v35 = vadd.f32 %v168_v29, %v58_v34 }
 0x13f   :  { %187 = vmatmul.mubr.msk.f32.vlgmr.msra.gmra.mrb[0].mxu0 %vm22_vm0, %v67_v35 }
 0x212   :  { %v188_v37 = vpop.f32.mrb[0].mxu0 }
 0x213   :  { %v157_v38 = vadd.f32 %v188_v37, %v169_v36  ;;  %v151_v39 = vpop.f32.mrb[1].mxu0 }
 0x214   :  { %v152_v40 = vadd.f32 %v169_v36, %v151_v39 }
 0x215   :  { %162 = vst.msk [vmem:[%s275_s5 + $0x8] sm:$0xff] %vm160_vm1, %v157_v38 }
 0x216   :  { %161 = vst.msk [vmem:[%s275_s5] sm:$0xff] %vm160_vm1, %v152_v40 }

// kernel: all_atom_decoder_forward.15
= control target key start
LH: loop header
LB: loop body
LE: loop exit
PB: predicated region body
PF: predicated region fallthrough
CT: control target
= control target key end

     0   :  { %s778_s18 = smov 0   ;;  %s780_s19 = smov 0   ;;  %s922_s0 = inlined_call_operand.vmem [shape: f32[8,8,16], index: 0, kind: input, shape index: {}]   ;;  %s923_s1 = inlined_call_operand.vmem [shape: f32[2,8,16], index: 1, kind: input, shape index: {}]   ;;  %s924_s2 = inlined_call_operand.vmem [shape: f32[2,8,16], index: 2, kind: input, shape index: {}]   ;;  %s925_s3 = inlined_call_operand.vmem [shape: f32[1,1,16], index: 3, kind: input, shape index: {}]   ;;  %s926_s4 = inlined_call_operand.vmem [shape: f32[1,1,16], index: 4, kind: input, shape index: {}]   ;;  %s927_s5 = inlined_call_operand.vmem [shape: f32[2,8,8,16], index: 5, kind: output, shape index: {}]  }
   0x1   :  { %s782_s20 = smov 0  }
   0x2 LB: > { %s27_s21 = sadd.s32 1, %s741_s19  ;;  %p671_p0 = scmp.ge.s32.totalorder %s745_s20, 1  ;;  %s745_s20 = sphi %s782_s20, %s15_s20   ;;  %s741_s19 = sphi %s780_s19, %s929_s19   ;;  %s737_s18 = sphi %s778_s18, %s928_s18  }
   0x3   : > { %p29_p1 = scmp.ge.s32.totalorder %s27_s21, 2  ;;  %p225_p2 = scmp.lt.s32.totalorder %s745_s20, 3 }
   0x5   : > { %s931_s21 = smov (%p29_p1, %s27_s21), 0  ;;  %p226_p3 = pnand %p671_p0, %p225_p2 }
   0x6   : > { %p274_p4 = scmp.lt.s32.totalorder (!%p226_p3), %s737_s18, 1  ;;  %v318_v0 = vlaneseq (!%p226_p3)  ;;  %v747_v1 = vmov (!%p226_p3), 1966171168   ;;  %v295_v6 = vld [vmem:[%s922_s0] sm:$0xff] (!%p226_p3)  ;;  %v297_v12 = vld [vmem:[%s922_s0 + $0x10] sm:$0xff] (!%p226_p3)  ;;  %v296_v13 = vld [vmem:[%s922_s0 + $0x8] sm:$0xff] (!%p226_p3) }
   0x7   : > { %229 = sbr.rel (%p226_p3) target bundleno = 357 (0x165), region = 40  ;;  %v316_v2 = vunpack.c.l.s4 (!%p226_p3), %v747_v1  ;;  %v298_v17 = vld [vmem:[%s922_s0 + $0x18] sm:$0xff] (!%p226_p3)  ;;  %v299_v18 = vld [vmem:[%s922_s0 + $0x20] sm:$0xff] (!%p226_p3)  ;;  %v300_v26 = vld [vmem:[%s922_s0 + $0x28] sm:$0xff] (!%p226_p3)  ;;  %vm411_vm0 = vcmask (!%p226_p3), 130048  }
   0x8   : > { %v319_v3 = vshrl.u32 (!%p226_p3), %v318_v0, 7  ;;  %v301_v34 = vld [vmem:[%s922_s0 + $0x30] sm:$0xff] (!%p226_p3)  ;;  %v302_v46 = vld [vmem:[%s922_s0 + $0x38] sm:$0xff] (!%p226_p3) }
   0x9   : > { %v317_v4 = vunpack.c.0.s8 (!%p226_p3), %v316_v2 }
   0xa   : > { %v365_v11 = vsub.s32 (!%p226_p3), 0, %v319_v3 }
   0xb   : > { %v320_v5 = vsub.s32 (!%p226_p3), %v317_v4, %v319_v3 }
   0xe   : > { %s933_s18 = smov (!%p274_p4, %s737_s18), 1 }
   0xf   : > { %s672_s22 = sshll.u32 %s933_s18, 3  ;;  %s680_s26 = sshll.u32 %s933_s18, 6 }
  0x10   : > { %s277_s25 = scalar_lea.vmem %s923_s1, %s672_s22  ;;  %s284_s28 = scalar_lea.vmem %s924_s2, %s672_s22 }
  0x11   : > { %v303_v7 = vld [vmem:[%s277_s25] sm:$0xff]  ;;  %s888_s6 = scalar_lea.vmem %s927_s5, %s680_s26 }
  0x12   : > { %v304_v8 = vld [vmem:[%s284_s28] sm:$0xff]  ;;  %v305_v14 = vadd.f32 %v303_v7, %v295_v6  ;;  %v307_v20 = vadd.f32 %v303_v7, %v297_v12  ;;  %v306_v21 = vadd.f32 %v303_v7, %v296_v13  ;;  %v308_v27 = vadd.f32 %v303_v7, %v298_v17 }
  0x13   : > { %v314_v9 = vcombine.high %v304_v8, %v304_v8  ;;  %v321_v10 = vrot.slane %v304_v8, %v320_v5  ;;  %v309_v28 = vadd.f32 %v303_v7, %v299_v18  ;;  %v310_v36 = vadd.f32 %v303_v7, %v300_v26 }
  0x14   : > { %v311_v45 = vadd.f32 %v303_v7, %v301_v34  ;;  %v312_v54 = vadd.f32 %v303_v7, %v302_v46 }
  0x15   : > { %v337_v15 = vrot.slane %v321_v10, %v320_v5  ;;  %v329_v16 = vcombine.high %v321_v10, %v321_v10  ;;  %v328_v19 = vrot.slane %v314_v9, %v320_v5 }
  0x17   : > { %v366_v22 = vrot.slane %v337_v15, %v365_v11  ;;  %v359_v23 = vcombine.high %v337_v15, %v337_v15  ;;  %v351_v24 = vrot.slane %v329_v16, %v320_v5  ;;  %v344_v25 = vrot.slane %v328_v19, %v320_v5 }
  0x18   : > { %v330_v29 = vcombine.high %v328_v19, %v328_v19 }
  0x19   : > { %v403_v30 = vadd.f32 %v366_v22, %v305_v14  ;;  %v374_v31 = vrot.slane %v359_v23, %v365_v11  ;;  %v370_v32 = vrot.slane %v351_v24, %v365_v11  ;;  %v361_v33 = vcombine.high %v351_v24, %v351_v24 }
  0x1a   : > { %v382_v35 = vrot.slane %v344_v25, %v365_v11  ;;  %v358_v37 = vrot.slane %v330_v29, %v320_v5  ;;  %v360_v38 = vcombine.high %v344_v25, %v344_v25 }
  0x1b   : > { %v412_v39 = vsel %vm411_vm0, %v403_v30, 0.0  ;;  %v405_v40 = vadd.f32 %v374_v31, %v307_v20  ;;  %v404_v41 = vadd.f32 %v370_v32, %v306_v21  ;;  %v378_v42 = vrot.slane %v361_v33, %v365_v11 }
  0x1c   : > { %413 = vadd.xlane.f32.xlu0 %v412_v39  ;;  %v407_v43 = vadd.f32 %v382_v35, %v309_v28  ;;  %v386_v44 = vrot.slane %v358_v37, %v365_v11  ;;  %v362_v47 = vcombine.high %v358_v37, %v358_v37  ;;  %v390_v51 = vrot.slane %v360_v38, %v365_v11 }
  0x1d   : > { %v418_v48 = vsel %vm411_vm0, %v405_v40, 0.0  ;;  %v415_v49 = vsel %vm411_vm0, %v404_v41, 0.0  ;;  %v406_v50 = vadd.f32 %v378_v42, %v308_v27 }
  0x1e   : > { %419 = vadd.xlane.f32.xlu1 %v418_v48  ;;  %v408_v53 = vadd.f32 %v386_v44, %v310_v36  ;;  %v394_v55 = vrot.slane %v362_v47, %v365_v11  ;;  %v424_v56 = vsel %vm411_vm0, %v407_v43, 0.0  ;;  %v409_v57 = vadd.f32 %v390_v51, %v311_v45 }
  0x1f   : > { %v421_v52 = vsel %vm411_vm0, %v406_v50, 0.0 }
  0x20   : > { %416 = vadd.xlane.f32.xlu0 %v415_v49  ;;  %v427_v58 = vsel %vm411_vm0, %v408_v53, 0.0  ;;  %v410_v59 = vadd.f32 %v394_v55, %v312_v54  ;;  %v430_v60 = vsel %vm411_vm0, %v409_v57, 0.0 }
  0x22   : > { %422 = vadd.xlane.f32.xlu1 %v421_v52  ;;  %v433_v61 = vsel %vm411_vm0, %v410_v59, 0.0 }
  0x24   : > { %425 = vadd.xlane.f32.xlu0 %v424_v56 }
  0x26   : > { %428 = vadd.xlane.f32.xlu1 %v427_v58  ;;  %v676_v58 = vld [vmem:[%s925_s3] ss:$0 sm:$0xff] }
  0x28   : > { %431 = vadd.xlane.f32.xlu0 %v430_v60 }
  0x2a   : > { %434 = vadd.xlane.f32.xlu1 %v433_v61 }
  0xa9   : > { %v414_v62 = vpop.xlane.xlu0 %413 }
  0xaa   : > { %v437_v63 = vmul.f32 0.0625, %v414_v62 }
  0xab   : > { %v420_v0 = vpop.xlane.xlu1 %419 }
  0xac   : > { %v837_v1 = vsub.f32 %v403_v30, %v437_v63  ;;  %v439_v2 = vmul.f32 0.0625, %v420_v0  ;;  %v677_v63 = vld [vmem:[%s926_s4] ss:$0 sm:$0xff] }
  0xad   : > { %v417_v3 = vpop.xlane.xlu0 %416 }
  0xae   : > { %v839_v4 = vsub.f32 %v405_v40, %v439_v2  ;;  %v438_v5 = vmul.f32 0.0625, %v417_v3  ;;  %v453_v6 = vmul.f32 %v837_v1, %v837_v1 }
  0xaf   : > { %v423_v7 = vpop.xlane.xlu1 %422 }
  0xb0   : > { %v843_v8 = vsub.f32 %v404_v41, %v438_v5  ;;  %v440_v9 = vmul.f32 0.0625, %v423_v7  ;;  %v461_v10 = vsel %vm411_vm0, %v453_v6, 0.0  ;;  %v455_v11 = vmul.f32 %v839_v4, %v839_v4 }
  0xb1   : > { %462 = vadd.xlane.f32.xlu0 %v461_v10  ;;  %v426_v12 = vpop.xlane.xlu0 %425 }
  0xb2   : > { %v848_v13 = vsub.f32 %v406_v50, %v440_v9  ;;  %v441_v14 = vmul.f32 0.0625, %v426_v12  ;;  %v467_v15 = vsel %vm411_vm0, %v455_v11, 0.0  ;;  %v454_v16 = vmul.f32 %v843_v8, %v843_v8 }
  0xb3   : > { %v429_v17 = vpop.xlane.xlu1 %428 }
  0xb4   : > { %v853_v18 = vsub.f32 %v407_v43, %v441_v14  ;;  %v442_v19 = vmul.f32 0.0625, %v429_v17  ;;  %v464_v20 = vsel %vm411_vm0, %v454_v16, 0.0  ;;  %v456_v21 = vmul.f32 %v848_v13, %v848_v13 }
  0xb5   : > { %468 = vadd.xlane.f32.xlu0 %v467_v15  ;;  %465 = vadd.xlane.f32.xlu1 %v464_v20  ;;  %v432_v22 = vpop.xlane.xlu0 %431 }
  0xb6   : > { %v858_v23 = vsub.f32 %v408_v53, %v442_v19  ;;  %v443_v24 = vmul.f32 0.0625, %v432_v22  ;;  %v470_v25 = vsel %vm411_vm0, %v456_v21, 0.0  ;;  %v457_v26 = vmul.f32 %v853_v18, %v853_v18 }
  0xb7   : > { %v435_v27 = vpop.xlane.xlu1 %434 }
  0xb8   : > { %v863_v28 = vsub.f32 %v409_v57, %v443_v24  ;;  %v444_v29 = vmul.f32 0.0625, %v435_v27  ;;  %v473_v30 = vsel %vm411_vm0, %v457_v26, 0.0  ;;  %v458_v31 = vmul.f32 %v858_v23, %v858_v23 }
  0xb9   : > { %471 = vadd.xlane.f32.xlu1 %v470_v25  ;;  %474 = vadd.xlane.f32.xlu0 %v473_v30 }
  0xba   : > { %v868_v32 = vsub.f32 %v410_v59, %v444_v29  ;;  %v476_v33 = vsel %vm411_vm0, %v458_v31, 0.0  ;;  %v459_v34 = vmul.f32 %v863_v28, %v863_v28 }
  0xbc   : > { %v479_v35 = vsel %vm411_vm0, %v459_v34, 0.0  ;;  %v460_v36 = vmul.f32 %v868_v32, %v868_v32 }
  0xbd   : > { %477 = vadd.xlane.f32.xlu1 %v476_v33  ;;  %480 = vadd.xlane.f32.xlu0 %v479_v35 }
  0xbe   : > { %v482_v37 = vsel %vm411_vm0, %v460_v36, 0.0 }
  0xc1   : > { %483 = vadd.xlane.f32.xlu1 %v482_v37 }
 0x13e   : > { %v463_v38 = vpop.xlane.xlu0 %462 }
 0x13f   : > { %v485_v39 = vmul.f32 0.0625, %v463_v38 }
 0x141   : > { %v493_v40 = vadd.f32 1e-05, %v485_v39 }
 0x142   : > { %v466_v41 = vpop.xlane.xlu1 %465  ;;  %v469_v42 = vpop.xlane.xlu0 %468 }
 0x143   : > { %707 = vrsqrt.f32 %v493_v40  ;;  %v486_v43 = vmul.f32 0.0625, %v466_v41  ;;  %v487_v44 = vmul.f32 0.0625, %v469_v42 }
 0x145   : > { %v494_v45 = vadd.f32 1e-05, %v486_v43  ;;  %v495_v46 = vadd.f32 1e-05, %v487_v44 }
 0x146   : > { %v472_v47 = vpop.xlane.xlu1 %471  ;;  %v475_v48 = vpop.xlane.xlu0 %474 }
 0x147   : > { %709 = vrsqrt.f32 %v494_v45  ;;  %v488_v49 = vmul.f32 0.0625, %v472_v47  ;;  %v489_v50 = vmul.f32 0.0625, %v475_v48 }
 0x148   : > { %711 = vrsqrt.f32 %v495_v46 }
 0x149   : > { %v496_v51 = vadd.f32 1e-05, %v488_v49  ;;  %v497_v52 = vadd.f32 1e-05, %v489_v50 }
 0x14a   : > { %v478_v53 = vpop.xlane.xlu1 %477  ;;  %v481_v54 = vpop.xlane.xlu0 %480 }
 0x14b   : > { %713 = vrsqrt.f32 %v496_v51  ;;  %v490_v55 = vmul.f32 0.0625, %v478_v53  ;;  %v491_v56 = vmul.f32 0.0625, %v481_v54 }
 0x14c   : > { %715 = vrsqrt.f32 %v497_v52 }
 0x14d   : > { %v708_v57 = vpop.eup %707  ;;  %v498_v59 = vadd.f32 1e-05, %v490_v55  ;;  %v499_v60 = vadd.f32 1e-05, %v491_v56 }
 0x14e   : > { %v509_v61 = vmul.f32 %v708_v57, %v837_v1  ;;  %v484_v62 = vpop.xlane.xlu1 %483 }
 0x14f   : > { %717 = vrsqrt.f32 %v498_v59  ;;  %v492_v0 = vmul.f32 0.0625, %v484_v62 }
 0x150   : > { %v524_v2 = vmul.f32 %v676_v58, %v509_v61  ;;  %719 = vrsqrt.f32 %v499_v60 }
 0x151   : > { %v710_v3 = vpop.eup %709  ;;  %v500_v5 = vadd.f32 1e-05, %v492_v0 }
 0x152   : > { %v712_v6 = vpop.eup %711  ;;  %v539_v1 = vadd.f32 %v677_v63, %v524_v2  ;;  %v510_v7 = vmul.f32 %v710_v3, %v843_v8 }
 0x153   : > { %v511_v9 = vmul.f32 %v712_v6, %v839_v4  ;;  %721 = vrsqrt.f32 %v500_v5 }
 0x154   : > { %547 = vst.msk [vmem:[%s888_s6] sm:$0xff] %vm411_vm0, %v539_v1  ;;  %v525_v10 = vmul.f32 %v676_v58, %v510_v7 }
 0x155   : > { %v714_v11 = vpop.eup %713  ;;  %v526_v12 = vmul.f32 %v676_v58, %v511_v9 }
 0x156   : > { %v716_v14 = vpop.eup %715  ;;  %v540_v15 = vadd.f32 %v677_v63, %v525_v10  ;;  %v512_v16 = vmul.f32 %v714_v11, %v848_v13 }
 0x157   : > { %v541_v17 = vadd.f32 %v677_v63, %v526_v12  ;;  %v513_v19 = vmul.f32 %v716_v14, %v853_v18 }
 0x158   : > { %548 = vst.msk [vmem:[%s888_s6 + $0x8] sm:$0xff] %vm411_vm0, %v540_v15  ;;  %v527_v8 = vmul.f32 %v676_v58, %v512_v16 }
 0x159   : > { %v718_v20 = vpop.eup %717  ;;  %549 = vst.msk [vmem:[%s888_s6 + $0x10] sm:$0xff] %vm411_vm0, %v541_v17  ;;  %v528_v4 = vmul.f32 %v676_v58, %v513_v19 }
 0x15a   : > { %v720_v21 = vpop.eup %719  ;;  %v542_v22 = vadd.f32 %v677_v63, %v527_v8  ;;  %v514_v24 = vmul.f32 %v718_v20, %v858_v23 }
 0x15b   : > { %v543_v25 = vadd.f32 %v677_v63, %v528_v4  ;;  %v515_v13 = vmul.f32 %v720_v21, %v863_v28 }
 0x15c   : > { %550 = vst.msk [vmem:[%s888_s6 + $0x18] sm:$0xff] %vm411_vm0, %v542_v22  ;;  %v529_v18 = vmul.f32 %v676_v58, %v514_v24 }
 0x15d   : > { %v722_v26 = vpop.eup %721  ;;  %551 = vst.msk [vmem:[%s888_s6 + $0x20] sm:$0xff] %vm411_vm0, %v543_v25  ;;  %v530_v27 = vmul.f32 %v676_v58, %v515_v13 }
 0x15e   : > { %v544_v29 = vadd.f32 %v677_v63, %v529_v18  ;;  %v516_v30 = vmul.f32 %v722_v26, %v868_v32 }
 0x15f   : > { %v545_v31 = vadd.f32 %v677_v63, %v530_v27 }
 0x160   : > { %552 = vst.msk [vmem:[%s888_s6 + $0x28] sm:$0xff] %vm411_vm0, %v544_v29  ;;  %v531_v33 = vmul.f32 %v676_v58, %v516_v30 }
 0x161   : > { %553 = vst.msk [vmem:[%s888_s6 + $0x30] sm:$0xff] %vm411_vm0, %v545_v31 }
 0x162   : > { %v546_v23 = vadd.f32 %v677_v63, %v531_v33 }
 0x164   : > { %554 = vst.msk [vmem:[%s888_s6 + $0x38] sm:$0xff] %vm411_vm0, %v546_v23 }
 0x165 PF: > { %s15_s20 = sadd.s32 1, %s745_s20   ;;  %s928_s18 = smov %s741_s19 }
 0x166   : > { %p12_p5 = scmp.ge.s32.totalorder %s15_s20, 4   ;;  %s929_s19 = smov %s931_s21 }
 0x168   :  { %14 = sbr.rel (!%p12_p5) target bundleno = 2 (0x2), region = 76 }

// kernel: all_atom_decoder_forward.18
= control target key start
LH: loop header
LB: loop body
LE: loop exit
PB: predicated region body
PF: predicated region fallthrough
CT: control target
= control target key end

     0   :  { %vm30_vm0 = vcmask 261120   ;;  %s212_s2 = inlined_call_operand.vmem [shape: f32[32,32], index: 2, kind: input, shape index: {}]   ;;  %s213_s1 = inlined_call_operand.vmem [shape: f32[16,32], index: 1, kind: input, shape index: {}]   ;;  %s214_s3 = inlined_call_operand.vmem [shape: f32[1,32], index: 3, kind: input, shape index: {}]   ;;  %s215_s0 = inlined_call_operand.vmem [shape: f32[16,32], index: 0, kind: input, shape index: {}]   ;;  %s216_s4 = inlined_call_operand.vmem [shape: f32[16,32], index: 4, kind: output, shape index: {}]  }
   0x1   :  { %v19_v0 = vld [vmem:[%s212_s2] sm:$0xff]  ;;  %v20_v1 = vld [vmem:[%s212_s2 + $0x8] sm:$0xff]  ;;  %v21_v2 = vld [vmem:[%s212_s2 + $0x10] sm:$0xff] }
   0x2   :  { %v142_v3 = vpack.c.bf16 %v20_v1, %v19_v0  ;;  %v22_v4 = vld [vmem:[%s212_s2 + $0x18] sm:$0xff]  ;;  %v17_v5 = vld [vmem:[%s213_s1] sm:$0xff]  ;;  %v18_v7 = vld [vmem:[%s213_s1 + $0x8] sm:$0xff] }
   0x3   :  { %v146_v6 = vpack.c.bf16 %v22_v4, %v21_v2  ;;  %139 = vmatprep.mubr.msk.f32.mxu0 %vm30_vm0, %v17_v5  ;;  %v122_v8 = vld [vmem:[%s214_s3] ss:$0 sm:$0xff]  ;;  %v113_v10 = vld [vmem:[%s215_s0 + $0x8] sm:$0xff] }
   0x4   :  { %143 = vmatprep.subr.bf16.mxu0 %v142_v3  ;;  %v112_v13 = vld [vmem:[%s215_s0] sm:$0xff] }
   0x5   :  { %145 = vmatpush3.bf16.msra.mxu0 %v142_v3 }
   0x6   :  { %147 = vmatprep.subr.bf16.mxu0 %v146_v6 }
   0x9   :  { %149 = vmatpush3.bf16.msra.mxu0 %v146_v6 }
   0xc   :  { %140 = vmatmul.mubr.msk.f32.vlgmr.msra.gmra.mrb[0].mxu0 %vm30_vm0, %v18_v7 }
  0xdf   :  { %v141_v9 = vpop.f32.mrb[0].mxu0 }
  0xe0   :  { %v109_v11 = vadd.f32 %v141_v9, %v122_v8  ;;  %v103_v12 = vpop.f32.mrb[1].mxu0 }
  0xe1   :  { %v104_v14 = vadd.f32 %v122_v8, %v103_v12 }
  0xe2   :  { %v115_v15 = vadd.f32 %v113_v10, %v109_v11 }
  0xe3   :  { %v114_v16 = vadd.f32 %v112_v13, %v104_v14 }
  0xe4   :  { %117 = vst.msk [vmem:[%s216_s4 + $0x8] sm:$0xff] %vm30_vm0, %v115_v15 }
  0xe5   :  { %116 = vst.msk [vmem:[%s216_s4] sm:$0xff] %vm30_vm0, %v114_v16 }

// kernel: all_atom_decoder_forward.17
= control target key start
LH: loop header
LB: loop body
LE: loop exit
PB: predicated region body
PF: predicated region fallthrough
CT: control target
= control target key end

     0   :  { %s1277_s15 = smov 0   ;;  %s1279_s16 = smov 0   ;;  %s1374_s0 = inlined_call_operand.vmem [shape: f32[2,4,8,8], index: 0, kind: input, shape index: {}]   ;;  %s1375_s1 = inlined_call_operand.vmem [shape: f32[2,4,8,8], index: 1, kind: input, shape index: {}]   ;;  %s1376_s2 = inlined_call_operand.vmem [shape: f32[2,4,8,8], index: 2, kind: input, shape index: {}]   ;;  %s1377_s3 = inlined_call_operand.vmem [shape: f32[2,4,8,8], index: 3, kind: input, shape index: {}]   ;;  %s1378_s4 = inlined_call_operand.vmem [shape: f32[2,4,8,8], index: 4, kind: output, shape index: {}]  }
   0x1   :  { %s1281_s17 = smov 0  }
   0x2 LB: > { %s26_s18 = sadd.s32 1, %s1244_s16  ;;  %p1098_p0 = scmp.ge.s32.totalorder %s1248_s17, 1  ;;  %s1248_s17 = sphi %s1281_s17, %s14_s17   ;;  %s1244_s16 = sphi %s1279_s16, %s1380_s16   ;;  %s1240_s15 = sphi %s1277_s15, %s1379_s15  }
   0x3   : > { %p28_p1 = scmp.ge.s32.totalorder %s26_s18, 2  ;;  %p216_p2 = scmp.lt.s32.totalorder %s1248_s17, 3 }
   0x5   : > { %s1382_s18 = smov (%p28_p1, %s26_s18), 0  ;;  %p217_p3 = pnand %p1098_p0, %p216_p2 }
   0x6   : > { %p266_p4 = scmp.lt.s32.totalorder (!%p217_p3), %s1240_s15, 1  ;;  %v1250_v0 = vmov (!%p217_p3), 0.0   ;;  %vm1251_vm0 = vmmov (!%p217_p3), 0   ;;  %vm316_vm1 = vcmask (!%p217_p3), 64512  }
   0x7   : > { %220 = sbr.rel (%p217_p3) target bundleno = 772 (0x304), region = 36  ;;  %1144 = vmatprep.subr.mxu0 (!%p217_p3), %v1250_v0  ;;  %1146 = vmatprep.mubr.msk.f32.mxu0 (!%p217_p3), %vm1251_vm0, %v1250_v0 }
   0x8   : > { %1149 = vmatprep.subr.mxu1 (!%p217_p3), %v1250_v0  ;;  %1151 = vmatprep.mubr.msk.f32.mxu1 (!%p217_p3), %vm1251_vm0, %v1250_v0 }
   0xe   : > { %s1384_s15 = smov (!%p266_p4, %s1240_s15), 1 }
   0xf   : > { %s1301_s19 = sshll.u32 %s1384_s15, 5 }
  0x10   : > { %s278_s22 = scalar_lea.vmem %s1375_s1, %s1301_s19  ;;  %s273_s25 = scalar_lea.vmem %s1374_s0, %s1301_s19 }
  0x11   : > { %v304_v1 = vld [vmem:[%s278_s22] sm:$0xff]  ;;  %v305_v2 = vld [vmem:[%s278_s22 + $0x8] sm:$0xff]  ;;  %v306_v5 = vld [vmem:[%s278_s22 + $0x10] sm:$0xff]  ;;  %s291_s28 = scalar_lea.vmem %s1377_s3, %s1301_s19  ;;  %s283_s5 = scalar_lea.vmem %s1376_s2, %s1301_s19 }
  0x12   : > { %1145 = vmatpush3.xpose.msk.msra.mxu0 %vm316_vm1, %v304_v1  ;;  %v300_v3 = vld [vmem:[%s273_s25] sm:$0xff]  ;;  %1150 = vmatpush3.xpose.msk.msra.mxu1 %vm316_vm1, %v305_v2  ;;  %v301_v4 = vld [vmem:[%s273_s25 + $0x8] sm:$0xff]  ;;  %v307_v6 = vld [vmem:[%s278_s22 + $0x18] sm:$0xff]  ;;  %s299_s8 = scalar_lea.vmem %s1378_s4, %s1301_s19 }
  0x13   : > { %1154 = vmatprep.subr.mxu0 %v1250_v0  ;;  %1159 = vmatprep.subr.mxu1 %v1250_v0  ;;  %v302_v7 = vld [vmem:[%s273_s25 + $0x10] sm:$0xff]  ;;  %v303_v8 = vld [vmem:[%s273_s25 + $0x18] sm:$0xff]  ;;  %v312_v11 = vld [vmem:[%s291_s28] sm:$0xff] }
  0x14   : > { %v313_v12 = vld [vmem:[%s291_s28 + $0x8] sm:$0xff]  ;;  %v314_v20 = vld [vmem:[%s291_s28 + $0x10] sm:$0xff]  ;;  %v315_v25 = vld [vmem:[%s291_s28 + $0x18] sm:$0xff] }
  0x15   : > { %1147 = vmatmul.mubr.msk.f32.vlgmr.msra.gmra.mrb[0].mxu0 %vm316_vm1, %v300_v3  ;;  %1152 = vmatmul.mubr.msk.f32.vlgmr.msra.gmra.mrb[0].mxu1 %vm316_vm1, %v301_v4  ;;  %v308_v53 = vld [vmem:[%s283_s5] sm:$0xff]  ;;  %v309_v54 = vld [vmem:[%s283_s5 + $0x8] sm:$0xff]  ;;  %v310_v61 = vld [vmem:[%s283_s5 + $0x10] sm:$0xff] }
  0x16   : > { %1155 = vmatpush3.xpose.msk.msra.mxu0 %vm316_vm1, %v306_v5  ;;  %1156 = vmatprep.mubr.msk.f32.mxu0 %vm1251_vm0, %v1250_v0  ;;  %v311_v2 = vld [vmem:[%s283_s5 + $0x18] sm:$0xff] }
  0x17   : > { %1160 = vmatpush3.xpose.msk.msra.mxu1 %vm316_vm1, %v307_v6  ;;  %1161 = vmatprep.mubr.msk.f32.mxu1 %vm1251_vm0, %v1250_v0 }
  0x18   : > { %1164 = vmatprep.subr.mxu0 %v1250_v0  ;;  %1169 = vmatprep.subr.mxu1 %v1250_v0 }
  0x19   : > { %1157 = vmatmul.mubr.msk.f32.vlgmr.msra.gmra.mrb[2].mxu0 %vm316_vm1, %v302_v7 }
  0x1a   : > { %1162 = vmatmul.mubr.msk.f32.vlgmr.msra.gmra.mrb[2].mxu1 %vm316_vm1, %v303_v8  ;;  %1166 = vmatprep.mubr.msk.f32.mxu0 %vm1251_vm0, %v1250_v0 }
  0x1b   : > { %1171 = vmatprep.mubr.msk.f32.mxu1 %vm1251_vm0, %v1250_v0  ;;  %1165 = vmatpush3.msra.mxu0 %v308_v53 }
  0x1c   : > { %1174 = vmatprep.subr.mxu0 %v1250_v0  ;;  %1170 = vmatpush3.msra.mxu1 %v309_v54 }
  0x1d   : > { %1179 = vmatprep.subr.mxu1 %v1250_v0 }
  0xe8   : > { %v389_v9 = vpop.f32.mrb[0].mxu0  ;;  %v465_v10 = vpop.f32.mrb[0].mxu1 }
  0xe9   : > { %v621_v13 = vmul.f32 0.35355338, %v389_v9  ;;  %v1148_v14 = vpop.f32.mrb[1].mxu0  ;;  %v622_v15 = vmul.f32 0.35355338, %v465_v10  ;;  %v1153_v16 = vpop.f32.mrb[1].mxu1 }
  0xeb   : > { %v625_v17 = vadd.f32 %v621_v13, %v312_v11  ;;  %v626_v18 = vadd.f32 %v622_v15, %v313_v12 }
  0xec   : > { %v541_v19 = vpop.f32.mrb[2].mxu0 }
  0xed   : > { %v623_v21 = vmul.f32 0.35355338, %v541_v19  ;;  %v1158_v22 = vpop.f32.mrb[3].mxu0  ;;  %v629_v23 = vsel %vm316_vm1, %v625_v17, -inf  ;;  %v617_v24 = vpop.f32.mrb[2].mxu1  ;;  %v632_v28 = vsel %vm316_vm1, %v626_v18, -inf }
  0xee   : > { %630 = vmax.xlane.f32.xlu0 %v629_v23  ;;  %v624_v26 = vmul.f32 0.35355338, %v617_v24  ;;  %v1163_v27 = vpop.f32.mrb[3].mxu1 }
  0xef   : > { %v627_v29 = vadd.f32 %v623_v21, %v314_v20 }
  0xf0   : > { %v628_v30 = vadd.f32 %v624_v26, %v315_v25 }
  0xf1   : > { %v635_v31 = vsel %vm316_vm1, %v627_v29, -inf }
  0xf2   : > { %633 = vmax.xlane.f32.xlu0 %v632_v28  ;;  %636 = vmax.xlane.f32.xlu1 %v635_v31  ;;  %v638_v32 = vsel %vm316_vm1, %v628_v30, -inf }
  0xf6   : > { %639 = vmax.xlane.f32.xlu1 %v638_v32 }
 0x17b   : > { %v631_v33 = vpop.xlane.xlu0 %630 }
 0x17c   : > { %v641_v34 = vsub.f32 %v625_v17, %v631_v33 }
 0x17e   : > { %v645_v35 = vmul.f32 1.442695, %v641_v34 }
 0x17f   : > { %v634_v36 = vpop.xlane.xlu0 %633  ;;  %v637_v37 = vpop.xlane.xlu1 %636 }
 0x180   : > { %1210 = vpow2.f32 %v645_v35  ;;  %v642_v38 = vsub.f32 %v626_v18, %v634_v36  ;;  %v643_v39 = vsub.f32 %v627_v29, %v637_v37 }
 0x182   : > { %v647_v40 = vmul.f32 1.442695, %v642_v38  ;;  %v649_v41 = vmul.f32 1.442695, %v643_v39 }
 0x183   : > { %v640_v42 = vpop.xlane.xlu1 %639 }
 0x184   : > { %1212 = vpow2.f32 %v647_v40  ;;  %v644_v43 = vsub.f32 %v628_v30, %v640_v42 }
 0x185   : > { %1214 = vpow2.f32 %v649_v41 }
 0x186   : > { %v651_v44 = vmul.f32 1.442695, %v644_v43 }
 0x188   : > { %1216 = vpow2.f32 %v651_v44 }
 0x18a   : > { %v1211_v45 = vpop.eup %1210 }
 0x18b   : > { %v653_v46 = vsel %vm316_vm1, %v1211_v45, 0.0 }
 0x18c   : > { %654 = vadd.xlane.f32.xlu0 %v653_v46 }
 0x18e   : > { %v1213_v47 = vpop.eup %1212 }
 0x18f   : > { %v1215_v48 = vpop.eup %1214  ;;  %v656_v49 = vsel %vm316_vm1, %v1213_v47, 0.0 }
 0x190   : > { %657 = vadd.xlane.f32.xlu1 %v656_v49  ;;  %v659_v50 = vsel %vm316_vm1, %v1215_v48, 0.0 }
 0x191   : > { %660 = vadd.xlane.f32.xlu0 %v659_v50 }
 0x192   : > { %v1217_v51 = vpop.eup %1216 }
 0x193   : > { %v662_v52 = vsel %vm316_vm1, %v1217_v51, 0.0 }
 0x194   : > { %663 = vadd.xlane.f32.xlu1 %v662_v52 }
 0x219   : > { %v655_v55 = vpop.xlane.xlu0 %654 }
 0x21a   : > { %1218 = vrcp.f32 %v655_v55 }
 0x21d   : > { %v658_v56 = vpop.xlane.xlu1 %657 }
 0x21e   : > { %v661_v57 = vpop.xlane.xlu0 %660  ;;  %1220 = vrcp.f32 %v658_v56 }
 0x21f   : > { %1222 = vrcp.f32 %v661_v57 }
 0x221   : > { %v664_v58 = vpop.xlane.xlu1 %663 }
 0x222   : > { %1224 = vrcp.f32 %v664_v58 }
 0x224   : > { %v1219_v59 = vpop.eup %1218 }
 0x225   : > { %v669_v60 = vmul.f32 %v1219_v59, %v1211_v45 }
 0x227   : > { %1167 = vmatmul.mubr.msk.f32.vlgmr.msra.gmra.mrb[4].mxu0 %vm316_vm1, %v669_v60 }
 0x228   : > { %v1221_v62 = vpop.eup %1220  ;;  %1175 = vmatpush3.msra.mxu0 %v310_v61  ;;  %1176 = vmatprep.mubr.msk.f32.mxu0 %vm1251_vm0, %v1250_v0 }
 0x229   : > { %v1223_v63 = vpop.eup %1222  ;;  %v670_v1 = vmul.f32 %v1221_v62, %v1213_v47 }
 0x22a   : > { %v671_v3 = vmul.f32 %v1223_v63, %v1215_v48 }
 0x22b   : > { %1172 = vmatmul.mubr.msk.f32.vlgmr.msra.gmra.mrb[4].mxu1 %vm316_vm1, %v670_v1 }
 0x22c   : > { %v1225_v4 = vpop.eup %1224  ;;  %1177 = vmatmul.mubr.msk.f32.vlgmr.msra.gmra.mrb[6].mxu0 %vm316_vm1, %v671_v3  ;;  %1180 = vmatpush3.msra.mxu1 %v311_v2 }
 0x22d   : > { %v672_v5 = vmul.f32 %v1225_v4, %v1217_v51  ;;  %1181 = vmatprep.mubr.msk.f32.mxu1 %vm1251_vm0, %v1250_v0 }
 0x22f   : > { %1182 = vmatmul.mubr.msk.f32.vlgmr.msra.gmra.mrb[6].mxu1 %vm316_vm1, %v672_v5 }
 0x2fa   : > { %v742_v6 = vpop.f32.mrb[4].mxu0 }
 0x2fb   : > { %965 = vst.msk [vmem:[%s299_s8] sm:$0xff] %vm316_vm1, %v742_v6  ;;  %v1168_v7 = vpop.f32.mrb[5].mxu0 }
 0x2fe   : > { %v815_v8 = vpop.f32.mrb[4].mxu1 }
 0x2ff   : > { %966 = vst.msk [vmem:[%s299_s8 + $0x8] sm:$0xff] %vm316_vm1, %v815_v8  ;;  %v888_v9 = vpop.f32.mrb[6].mxu0  ;;  %v1173_v10 = vpop.f32.mrb[5].mxu1 }
 0x300   : > { %967 = vst.msk [vmem:[%s299_s8 + $0x10] sm:$0xff] %vm316_vm1, %v888_v9  ;;  %v1178_v11 = vpop.f32.mrb[7].mxu0 }
 0x302   : > { %v961_v12 = vpop.f32.mrb[6].mxu1 }
 0x303   : > { %968 = vst.msk [vmem:[%s299_s8 + $0x18] sm:$0xff] %vm316_vm1, %v961_v12  ;;  %v1183_v0 = vpop.f32.mrb[7].mxu1 }
 0x304 PF: > { %s14_s17 = sadd.s32 1, %s1248_s17   ;;  %s1379_s15 = smov %s1244_s16 }
 0x305   : > { %p11_p5 = scmp.ge.s32.totalorder %s14_s17, 4   ;;  %s1380_s16 = smov %s1382_s18 }
 0x307   :  { %13 = sbr.rel (!%p11_p5) target bundleno = 2 (0x2), region = 75 }

// kernel: all_atom_decoder_forward.23
= control target key start
LH: loop header
LB: loop body
LE: loop exit
PB: predicated region body
PF: predicated region fallthrough
CT: control target
= control target key end

     0   :  { %vm35_vm0 = vcmask 261120   ;;  %s693_s0 = inlined_call_operand.vmem [shape: f32[16,32], index: 0, kind: input, shape index: {}]   ;;  %s694_s1 = inlined_call_operand.vmem [shape: f32[1,32], index: 1, kind: input, shape index: {}]   ;;  %s695_s2 = inlined_call_operand.vmem [shape: f32[1,32], index: 2, kind: input, shape index: {}]   ;;  %s696_s3 = inlined_call_operand.vmem [shape: f32[32,64], index: 3, kind: input, shape index: {}]   ;;  %s697_s4 = inlined_call_operand.vmem [shape: f32[1,64], index: 4, kind: input, shape index: {}]   ;;  %s698_s5 = inlined_call_operand.vmem [shape: f32[32,64], index: 5, kind: input, shape index: {}]   ;;  %s699_s6 = inlined_call_operand.vmem [shape: f32[1,64], index: 6, kind: input, shape index: {}]   ;;  %s700_s7 = inlined_call_operand.vmem [shape: f32[64,32], index: 7, kind: input, shape index: {}]   ;;  %s701_s8 = inlined_call_operand.vmem [shape: f32[1,32], index: 8, kind: input, shape index: {}]   ;;  %s702_s9 = inlined_call_operand.hbm [shape: f32[16,32], index: 9, kind: output, shape index: {}]  }
   0x1   :  { %v595_v0 = vld [vmem:[%s693_s0] sm:$0xff]  ;;  %v600_v1 = vld [vmem:[%s693_s0 + $0x8] sm:$0xff] }
   0x2   :  { %14 = vsyncpa [#allocation3], 0  ;;  %v36_v2 = vsel %vm35_vm0, %v595_v0, 0.0  ;;  %v39_v3 = vsel %vm35_vm0, %v600_v1, 0.0  ;;  %v81_v14 = vld [vmem:[%s696_s3] sm:$0xff]  ;;  %v82_v15 = vld [vmem:[%s696_s3 + $0x8] sm:$0xff] }
   0x3   :  { %37 = vadd.xlane.f32.xlu0 %v36_v2  ;;  %v83_v16 = vld [vmem:[%s696_s3 + $0x10] sm:$0xff]  ;;  %v468_v17 = vpack.c.bf16 %v82_v15, %v81_v14  ;;  %v84_v18 = vld [vmem:[%s696_s3 + $0x18] sm:$0xff]  ;;  %v173_v20 = vld [vmem:[%s698_s5] sm:$0xff]  ;;  %vm290_vm1 = vcmask 523264   ;;  %s539_s25 = smov [#allocation2]  }
   0x4   :  { %v472_v19 = vpack.c.bf16 %v84_v18, %v83_v16  ;;  %v174_v21 = vld [vmem:[%s698_s5 + $0x8] sm:$0xff]  ;;  %v392_v30 = vld [vmem:[%s694_s1] ss:$0 sm:$0xff]  ;;  %v175_v37 = vld [vmem:[%s698_s5 + $0x10] sm:$0xff] }
   0x5   :  { %469 = vmatprep.subr.bf16.mxu1 %v468_v17  ;;  %v476_v22 = vpack.c.bf16 %v174_v21, %v173_v20  ;;  %v393_v32 = vld [vmem:[%s695_s2] ss:$0 sm:$0xff]  ;;  %v176_v38 = vld [vmem:[%s698_s5 + $0x18] sm:$0xff]  ;;  %v276_v43 = vld [vmem:[%s700_s7 + $0x8] sm:$0xff] }
   0x6   :  { %471 = vmatpush3.bf16.msra.mxu1 %v468_v17  ;;  %v480_v41 = vpack.c.bf16 %v176_v38, %v175_v37  ;;  %v275_v42 = vld [vmem:[%s700_s7] sm:$0xff]  ;;  %v277_v45 = vld [vmem:[%s700_s7 + $0x10] sm:$0xff]  ;;  %v278_v46 = vld [vmem:[%s700_s7 + $0x18] sm:$0xff] }
   0x7   :  { %40 = vadd.xlane.f32.xlu0 %v39_v3  ;;  %473 = vmatprep.subr.bf16.mxu1 %v472_v19  ;;  %v484_v44 = vpack.c.bf16 %v276_v43, %v275_v42  ;;  %v488_v47 = vpack.c.bf16 %v278_v46, %v277_v45  ;;  %v279_v48 = vld [vmem:[%s700_s7 + $0x20] sm:$0xff]  ;;  %v280_v49 = vld [vmem:[%s700_s7 + $0x28] sm:$0xff]  ;;  %v281_v51 = vld [vmem:[%s700_s7 + $0x30] sm:$0xff] }
   0x8   :  { %v492_v50 = vpack.c.bf16 %v280_v49, %v279_v48  ;;  %v282_v52 = vld [vmem:[%s700_s7 + $0x38] sm:$0xff]  ;;  %v394_v54 = vld [vmem:[%s697_s4] ss:$0 sm:$0xff] }
   0x9   :  { %485 = vmatprep.subr.bf16.mxu0 %v484_v44  ;;  %v496_v53 = vpack.c.bf16 %v282_v52, %v281_v51  ;;  %v402_v14 = vld [vmem:[%s701_s8] ss:$0 sm:$0xff] }
   0xa   :  { %475 = vmatpush3.bf16.msra.mxu1 %v472_v19  ;;  %487 = vmatpush3.bf16.msra.mxu0 %v484_v44 }
   0xb   :  { %477 = vmatprep.subr.bf16.mxu1 %v476_v22  ;;  %489 = vmatprep.subr.bf16.mxu0 %v488_v47 }
   0xe   :  { %491 = vmatpush3.bf16.msra.mxu0 %v488_v47 }
   0xf   :  { %493 = vmatprep.subr.bf16.mxu0 %v492_v50 }
  0x12   :  { %495 = vmatpush3.bf16.msra.mxu0 %v492_v50 }
  0x13   :  { %497 = vmatprep.subr.bf16.mxu0 %v496_v53 }
  0x16   :  { %499 = vmatpush3.bf16.msra.mxu0 %v496_v53 }
  0x90   :  { %v38_v4 = vpop.xlane.xlu0 %37 }
  0x91   :  { %v43_v5 = vmul.f32 0.03125, %v38_v4 }
  0x93   :  { %v45_v6 = vsub.f32 %v595_v0, %v43_v5  ;;  %v397_v5 = vld [vmem:[%s699_s6] ss:$0 sm:$0xff]  ;;  %s381_s6 = sshll.u32 %s539_s25, 4  ;;  %s382_s6 = int_to_ptr.vmem [resolvable:$true] %s381_s6 }
  0x94   :  { %v41_v7 = vpop.xlane.xlu0 %40  ;;  %s515_s26 = scalar_lea.vmem %s382_s6, 256  ;;  %p520_p1 = scmp.lt.s32.totalorder %s382_s6, %s382_s6 }
  0x95   :  { %v44_v8 = vmul.f32 0.03125, %v41_v7  ;;  %v47_v9 = vmul.f32 %v45_v6, %v45_v6  ;;  %p516_p0 = scmp.ne.s32.totalorder %s382_s6, %s515_s26  ;;  %p521_p2 = scmp.lt.s32.totalorder %s515_s26, %s515_s26 }
  0x97   :  { %v46_v10 = vsub.f32 %v600_v1, %v44_v8  ;;  %v49_v11 = vsel %vm35_vm0, %v47_v9, 0.0  ;;  %p522_p3 = por %p521_p2, %p520_p1 }
  0x98   :  { %50 = vadd.xlane.f32.xlu1 %v49_v11 }
  0x99   :  { %v48_v12 = vmul.f32 %v46_v10, %v46_v10  ;;  %p523_p4 = pnand %p522_p3, %p516_p0 }
  0x9b   :  { %v52_v13 = vsel %vm35_vm0, %v48_v12, 0.0 }
  0x9c   :  { %53 = vadd.xlane.f32.xlu1 %v52_v13 }
 0x125   :  { %v51_v23 = vpop.xlane.xlu1 %50 }
 0x126   :  { %v55_v24 = vmul.f32 0.03125, %v51_v23 }
 0x128   :  { %v57_v25 = vadd.f32 1e-05, %v55_v24 }
 0x129   :  { %v54_v26 = vpop.xlane.xlu1 %53 }
 0x12a   :  { %503 = vrsqrt.f32 %v57_v25  ;;  %v56_v27 = vmul.f32 0.03125, %v54_v26 }
 0x12c   :  { %v58_v28 = vadd.f32 1e-05, %v56_v27 }
 0x12e   :  { %505 = vrsqrt.f32 %v58_v28 }
 0x134   :  { %v504_v29 = vpop.eup %503 }
 0x135   :  { %v61_v31 = vmul.f32 %v504_v29, %v45_v6 }
 0x137   :  { %v70_v33 = vmul.f32 %v392_v30, %v61_v31 }
 0x138   :  { %v506_v34 = vpop.eup %505 }
 0x139   :  { %v62_v35 = vmul.f32 %v506_v34, %v46_v10  ;;  %v79_v36 = vadd.f32 %v393_v32, %v70_v33 }
 0x13b   :  { %v71_v39 = vmul.f32 %v392_v30, %v62_v35  ;;  %435 = vmatprep.mubr.msk.f32.mxu1 %vm35_vm0, %v79_v36 }
 0x13d   :  { %v80_v40 = vadd.f32 %v393_v32, %v71_v39 }
 0x13f   :  { %436 = vmatmul.mubr.msk.f32.vlgmr.msra.gmra.mrb[0].mxu1 %vm35_vm0, %v80_v40 }
 0x140   :  { %479 = vmatpush3.bf16.msra.mxu1 %v476_v22  ;;  %446 = vmatprep.mubr.msk.f32.mxu1 %vm35_vm0, %v79_v36 }
 0x141   :  { %481 = vmatprep.subr.bf16.mxu1 %v480_v41 }
 0x144   :  { %483 = vmatpush3.bf16.msra.mxu1 %v480_v41 }
 0x147   :  { %447 = vmatmul.mubr.msk.f32.vlgmr.msra.gmra.mrb[2].mxu1 %vm35_vm0, %v80_v40 }
 0x212   :  { %v437_v55 = vpop.f32.mrb[0].mxu1 }
 0x213   :  { %v170_v56 = vadd.f32 %v437_v55, %v394_v54  ;;  %v164_v57 = vpop.f32.mrb[1].mxu1 }
 0x214   :  { %v165_v58 = vadd.f32 %v394_v54, %v164_v57 }
 0x215   :  { %v401_v59 = vmul.f32 -1.442695, %v170_v56 }
 0x216   :  { %v400_v60 = vmul.f32 -1.442695, %v165_v58 }
 0x217   :  { %507 = vpow2.f32 %v401_v59 }
 0x218   :  { %509 = vpow2.f32 %v400_v60 }
 0x21a   :  { %v448_v61 = vpop.f32.mrb[2].mxu1 }
 0x21b   :  { %v250_v62 = vpop.f32.mrb[3].mxu1  ;;  %v256_v9 = vadd.f32 %v448_v61, %v397_v5 }
 0x21c   :  { %v251_v11 = vadd.f32 %v397_v5, %v250_v62 }
 0x221   :  { %v508_v63 = vpop.eup %507 }
 0x222   :  { %v510_v2 = vpop.eup %509  ;;  %v266_v3 = vadd.f32 1.0, %v508_v63 }
 0x223   :  { %v265_v4 = vadd.f32 1.0, %v510_v2 }
 0x224   :  { %511 = vrcp.f32 %v266_v3 }
 0x225   :  { %513 = vrcp.f32 %v265_v4 }
 0x22e   :  { %v512_v6 = vpop.eup %511 }
 0x22f   :  { %v514_v7 = vpop.eup %513  ;;  %v272_v8 = vmul.f32 %v512_v6, %v170_v56 }
 0x230   :  { %v271_v10 = vmul.f32 %v514_v7, %v165_v58 }
 0x231   :  { %v274_v12 = vmul.f32 %v272_v8, %v256_v9 }
 0x232   :  { %v273_v13 = vmul.f32 %v271_v10, %v251_v11 }
 0x234   :  { %465 = vmatprep.mubr.msk.f32.mxu0 %vm290_vm1, %v273_v13 }
 0x235   :  { %466 = vmatmul.mubr.msk.f32.vlgmr.msra.gmra.mrb[0].mxu0 %vm290_vm1, %v274_v12 }
 0x308   :  { %v467_v15 = vpop.f32.mrb[0].mxu0 }
 0x309   :  { %v369_v16 = vadd.f32 %v467_v15, %v402_v14  ;;  %v363_v17 = vpop.f32.mrb[1].mxu0 }
 0x30a   :  { %v364_v18 = vadd.f32 %v402_v14, %v363_v17 }
 0x30b   :  { %v373_v19 = vadd.f32 %v369_v16, %v600_v1 }
 0x30c   :  { %v372_v20 = vadd.f32 %v364_v18, %v595_v0 }
 0x30d   :  { %375 = vst.msk [vmem:[#allocation2 + $0x8] sm:$0xff] %vm35_vm0, %v373_v19 }
 0x30e   :  { %374 = vst.msk [vmem:[#allocation2] sm:$0xff] %vm35_vm0, %v372_v20 }
 0x30f   :  { %526 = shalt.err (!%p523_p4)
}
 0x310   :  { %s527_s28 = scalar_lea.hbm %s702_s9, 256 }
 0x311   :  { %p528_p5 = scmp.ne.s32.totalorder %s702_s9, %s527_s28  ;;  %p531_p6 = scmp.lt.u32.totalorder %s527_s28, %s702_s9 }
 0x313   :  { %p533_p7 = pnand %p531_p6, %p528_p5 }
 0x315   :  { %536 = shalt.err (!%p533_p7)
}
 0x316   :  { %s540_s10 = smov 128   ;;  %s541_s5 = smov 8  }
 0x317   :  { %387 = dma.vmem_to_hbm [thread:$0]  %s382_s6, 256, %s702_s9, [#allocation3], %s540_s10, %s540_s10, %s541_s5  }
 0x318   :  { %537 = dma.done.wait [#allocation3], 256  }
 0x319   :  { %538 = vsyncadd [#allocation3], 4294967040 }
 0x31a   :  { %391 = vsyncpa [#allocation3], 1 }

// kernel: all_atom_decoder_forward.19
= control target key start
LH: loop header
LB: loop body
LE: loop exit
PB: predicated region body
PF: predicated region fallthrough
CT: control target
= control target key end

     0   :  { %vm34_vm0 = vcmask 261120   ;;  %vm289_vm1 = vcmask 523264   ;;  %s644_s0 = inlined_call_operand.vmem [shape: f32[16,32], index: 0, kind: input, shape index: {}]   ;;  %s645_s3 = inlined_call_operand.vmem [shape: f32[32,64], index: 3, kind: input, shape index: {}]   ;;  %s646_s5 = inlined_call_operand.vmem [shape: f32[32,64], index: 5, kind: input, shape index: {}]   ;;  %s647_s1 = inlined_call_operand.vmem [shape: f32[1,32], index: 1, kind: input, shape index: {}]   ;;  %s648_s2 = inlined_call_operand.vmem [shape: f32[1,32], index: 2, kind: input, shape index: {}]   ;;  %s649_s7 = inlined_call_operand.vmem [shape: f32[64,32], index: 7, kind: input, shape index: {}]   ;;  %s650_s4 = inlined_call_operand.vmem [shape: f32[1,64], index: 4, kind: input, shape index: {}]   ;;  %s651_s6 = inlined_call_operand.vmem [shape: f32[1,64], index: 6, kind: input, shape index: {}]   ;;  %s652_s8 = inlined_call_operand.vmem [shape: f32[1,32], index: 8, kind: input, shape index: {}]   ;;  %s653_s9 = inlined_call_operand.vmem [shape: f32[16,32], index: 9, kind: output, shape index: {}]  }
   0x1   :  { %v552_v0 = vld [vmem:[%s644_s0] sm:$0xff]  ;;  %v557_v1 = vld [vmem:[%s644_s0 + $0x8] sm:$0xff]  ;;  %v82_v16 = vld [vmem:[%s645_s3 + $0x10] sm:$0xff] }
   0x2   :  { %v35_v2 = vsel %vm34_vm0, %v552_v0, 0.0  ;;  %v38_v3 = vsel %vm34_vm0, %v557_v1, 0.0  ;;  %v80_v14 = vld [vmem:[%s645_s3] sm:$0xff]  ;;  %v81_v15 = vld [vmem:[%s645_s3 + $0x8] sm:$0xff]  ;;  %v83_v18 = vld [vmem:[%s645_s3 + $0x18] sm:$0xff] }
   0x3   :  { %36 = vadd.xlane.f32.xlu0 %v35_v2  ;;  %v455_v17 = vpack.c.bf16 %v81_v15, %v80_v14  ;;  %v459_v19 = vpack.c.bf16 %v83_v18, %v82_v16  ;;  %v172_v20 = vld [vmem:[%s646_s5] sm:$0xff]  ;;  %v173_v21 = vld [vmem:[%s646_s5 + $0x8] sm:$0xff]  ;;  %v174_v37 = vld [vmem:[%s646_s5 + $0x10] sm:$0xff] }
   0x4   :  { %v463_v22 = vpack.c.bf16 %v173_v21, %v172_v20  ;;  %v379_v30 = vld [vmem:[%s647_s1] ss:$0 sm:$0xff]  ;;  %v175_v38 = vld [vmem:[%s646_s5 + $0x18] sm:$0xff]  ;;  %v275_v43 = vld [vmem:[%s649_s7 + $0x8] sm:$0xff] }
   0x5   :  { %456 = vmatprep.subr.bf16.mxu1 %v455_v17  ;;  %v380_v32 = vld [vmem:[%s648_s2] ss:$0 sm:$0xff]  ;;  %v467_v41 = vpack.c.bf16 %v175_v38, %v174_v37  ;;  %v276_v45 = vld [vmem:[%s649_s7 + $0x10] sm:$0xff]  ;;  %v277_v46 = vld [vmem:[%s649_s7 + $0x18] sm:$0xff] }
   0x6   :  { %458 = vmatpush3.bf16.msra.mxu1 %v455_v17  ;;  %v274_v42 = vld [vmem:[%s649_s7] sm:$0xff]  ;;  %v475_v47 = vpack.c.bf16 %v277_v46, %v276_v45  ;;  %v279_v49 = vld [vmem:[%s649_s7 + $0x28] sm:$0xff]  ;;  %v280_v51 = vld [vmem:[%s649_s7 + $0x30] sm:$0xff] }
   0x7   :  { %39 = vadd.xlane.f32.xlu0 %v38_v3  ;;  %460 = vmatprep.subr.bf16.mxu1 %v459_v19  ;;  %v471_v44 = vpack.c.bf16 %v275_v43, %v274_v42  ;;  %v278_v48 = vld [vmem:[%s649_s7 + $0x20] sm:$0xff]  ;;  %v281_v52 = vld [vmem:[%s649_s7 + $0x38] sm:$0xff] }
   0x8   :  { %v479_v50 = vpack.c.bf16 %v279_v49, %v278_v48  ;;  %v483_v53 = vpack.c.bf16 %v281_v52, %v280_v51  ;;  %v381_v54 = vld [vmem:[%s650_s4] ss:$0 sm:$0xff] }
   0x9   :  { %472 = vmatprep.subr.bf16.mxu0 %v471_v44  ;;  %v389_v14 = vld [vmem:[%s652_s8] ss:$0 sm:$0xff] }
   0xa   :  { %462 = vmatpush3.bf16.msra.mxu1 %v459_v19  ;;  %474 = vmatpush3.bf16.msra.mxu0 %v471_v44 }
   0xb   :  { %464 = vmatprep.subr.bf16.mxu1 %v463_v22  ;;  %476 = vmatprep.subr.bf16.mxu0 %v475_v47 }
   0xe   :  { %478 = vmatpush3.bf16.msra.mxu0 %v475_v47 }
   0xf   :  { %480 = vmatprep.subr.bf16.mxu0 %v479_v50 }
  0x12   :  { %482 = vmatpush3.bf16.msra.mxu0 %v479_v50 }
  0x13   :  { %484 = vmatprep.subr.bf16.mxu0 %v483_v53 }
  0x16   :  { %486 = vmatpush3.bf16.msra.mxu0 %v483_v53 }
  0x90   :  { %v37_v4 = vpop.xlane.xlu0 %36 }
  0x91   :  { %v42_v5 = vmul.f32 0.03125, %v37_v4 }
  0x93   :  { %v44_v6 = vsub.f32 %v552_v0, %v42_v5  ;;  %v384_v5 = vld [vmem:[%s651_s6] ss:$0 sm:$0xff] }
  0x94   :  { %v40_v7 = vpop.xlane.xlu0 %39 }
  0x95   :  { %v43_v8 = vmul.f32 0.03125, %v40_v7  ;;  %v46_v9 = vmul.f32 %v44_v6, %v44_v6 }
  0x97   :  { %v45_v10 = vsub.f32 %v557_v1, %v43_v8  ;;  %v48_v11 = vsel %vm34_vm0, %v46_v9, 0.0 }
  0x98   :  { %49 = vadd.xlane.f32.xlu1 %v48_v11 }
  0x99   :  { %v47_v12 = vmul.f32 %v45_v10, %v45_v10 }
  0x9b   :  { %v51_v13 = vsel %vm34_vm0, %v47_v12, 0.0 }
  0x9c   :  { %52 = vadd.xlane.f32.xlu1 %v51_v13 }
 0x125   :  { %v50_v23 = vpop.xlane.xlu1 %49 }
 0x126   :  { %v54_v24 = vmul.f32 0.03125, %v50_v23 }
 0x128   :  { %v56_v25 = vadd.f32 1e-05, %v54_v24 }
 0x129   :  { %v53_v26 = vpop.xlane.xlu1 %52 }
 0x12a   :  { %487 = vrsqrt.f32 %v56_v25  ;;  %v55_v27 = vmul.f32 0.03125, %v53_v26 }
 0x12c   :  { %v57_v28 = vadd.f32 1e-05, %v55_v27 }
 0x12e   :  { %489 = vrsqrt.f32 %v57_v28 }
 0x134   :  { %v488_v29 = vpop.eup %487 }
 0x135   :  { %v60_v31 = vmul.f32 %v488_v29, %v44_v6 }
 0x137   :  { %v69_v33 = vmul.f32 %v379_v30, %v60_v31 }
 0x138   :  { %v490_v34 = vpop.eup %489 }
 0x139   :  { %v61_v35 = vmul.f32 %v490_v34, %v45_v10  ;;  %v78_v36 = vadd.f32 %v380_v32, %v69_v33 }
 0x13b   :  { %v70_v39 = vmul.f32 %v379_v30, %v61_v35  ;;  %422 = vmatprep.mubr.msk.f32.mxu1 %vm34_vm0, %v78_v36 }
 0x13d   :  { %v79_v40 = vadd.f32 %v380_v32, %v70_v39 }
 0x13f   :  { %423 = vmatmul.mubr.msk.f32.vlgmr.msra.gmra.mrb[0].mxu1 %vm34_vm0, %v79_v40 }
 0x140   :  { %466 = vmatpush3.bf16.msra.mxu1 %v463_v22  ;;  %433 = vmatprep.mubr.msk.f32.mxu1 %vm34_vm0, %v78_v36 }
 0x141   :  { %468 = vmatprep.subr.bf16.mxu1 %v467_v41 }
 0x144   :  { %470 = vmatpush3.bf16.msra.mxu1 %v467_v41 }
 0x147   :  { %434 = vmatmul.mubr.msk.f32.vlgmr.msra.gmra.mrb[2].mxu1 %vm34_vm0, %v79_v40 }
 0x212   :  { %v424_v55 = vpop.f32.mrb[0].mxu1 }
 0x213   :  { %v169_v56 = vadd.f32 %v424_v55, %v381_v54  ;;  %v163_v57 = vpop.f32.mrb[1].mxu1 }
 0x214   :  { %v164_v58 = vadd.f32 %v381_v54, %v163_v57 }
 0x215   :  { %v388_v59 = vmul.f32 -1.442695, %v169_v56 }
 0x216   :  { %v387_v60 = vmul.f32 -1.442695, %v164_v58 }
 0x217   :  { %491 = vpow2.f32 %v388_v59 }
 0x218   :  { %493 = vpow2.f32 %v387_v60 }
 0x21a   :  { %v435_v61 = vpop.f32.mrb[2].mxu1 }
 0x21b   :  { %v249_v62 = vpop.f32.mrb[3].mxu1  ;;  %v255_v9 = vadd.f32 %v435_v61, %v384_v5 }
 0x21c   :  { %v250_v11 = vadd.f32 %v384_v5, %v249_v62 }
 0x221   :  { %v492_v63 = vpop.eup %491 }
 0x222   :  { %v494_v2 = vpop.eup %493  ;;  %v265_v3 = vadd.f32 1.0, %v492_v63 }
 0x223   :  { %v264_v4 = vadd.f32 1.0, %v494_v2 }
 0x224   :  { %495 = vrcp.f32 %v265_v3 }
 0x225   :  { %497 = vrcp.f32 %v264_v4 }
 0x22e   :  { %v496_v6 = vpop.eup %495 }
 0x22f   :  { %v498_v7 = vpop.eup %497  ;;  %v271_v8 = vmul.f32 %v496_v6, %v169_v56 }
 0x230   :  { %v270_v10 = vmul.f32 %v498_v7, %v164_v58 }
 0x231   :  { %v273_v12 = vmul.f32 %v271_v8, %v255_v9 }
 0x232   :  { %v272_v13 = vmul.f32 %v270_v10, %v250_v11 }
 0x234   :  { %452 = vmatprep.mubr.msk.f32.mxu0 %vm289_vm1, %v272_v13 }
 0x235   :  { %453 = vmatmul.mubr.msk.f32.vlgmr.msra.gmra.mrb[0].mxu0 %vm289_vm1, %v273_v12 }
 0x308   :  { %v454_v15 = vpop.f32.mrb[0].mxu0 }
 0x309   :  { %v368_v16 = vadd.f32 %v454_v15, %v389_v14  ;;  %v362_v17 = vpop.f32.mrb[1].mxu0 }
 0x30a   :  { %v363_v18 = vadd.f32 %v389_v14, %v362_v17 }
 0x30b   :  { %v372_v19 = vadd.f32 %v368_v16, %v557_v1 }
 0x30c   :  { %v371_v20 = vadd.f32 %v363_v18, %v552_v0 }
 0x30d   :  { %374 = vst.msk [vmem:[%s653_s9 + $0x8] sm:$0xff] %vm34_vm0, %v372_v19 }
 0x30e   :  { %373 = vst.msk [vmem:[%s653_s9] sm:$0xff] %vm34_vm0, %v371_v20 }

</bundles_post_ra>
